<compile_context>
chip_gen: v6e
topology: v6e:2x2x1
jax: 0.10.0
libtpu: 0.0.40
codegen_flags: <defaults>
</compile_context>

<pallas_src>
import jax
import jax.numpy as jnp
from jax.experimental import pallas as pl
from jax.experimental.pallas import tpu as pltpu


# --------------------------- Pallas kernel ----------------------------------

def _fused_attention_kernel(w3d_ref, b3d_ref, bp_ref,              # SMEM scalars
                            patch_ref, g_ref, wcat_ref, bcat_ref, wp_ref,
                            out_ref):
    """Fused conv3d -> replicate-pad -> attention gate for one (batch, row-tile).

    Layout: channels on sublanes, flattened spatial (rows) on lanes.
      patch_ref : (54, F_l, rows)  im2col taps of the 3x3x3 conv (pad folded in)
      g_ref     : (F_g, rows)
      wcat_ref  : (F_int, F_g+F_l) folded [W_g | W_x] (BN folded)
      bcat_ref  : (F_int, 1)       folded b_g + b_x
      wp_ref    : (1, F_int)       folded psi weight
      w3d_ref   : (54,) SMEM ; b3d_ref : (1,) SMEM ; bp_ref : (1,) SMEM
      out_ref   : (F_l, rows)      x_padded * sigmoid(psi(...))
    """
    F_l, rows = out_ref.shape

    # Conv3d(2,1,3,padding=1) (+ replicate pad, already folded into the taps):
    # 54-term scalar*plane weighted sum over lane-dense (F_l, rows) planes.
    xp = jnp.full((F_l, rows), b3d_ref[0], dtype=jnp.float32)
    for k in range(54):
        xp = xp + w3d_ref[k] * patch_ref[k]

    # Fused W_g / W_x 1x1 convs (+folded BN): channels contract on the MXU,
    # spatial rows stay lane-dense.
    cat = jnp.concatenate([g_ref[...], xp], axis=0)                  # (F_g+F_l, rows)
    s = jnp.dot(wcat_ref[...], cat, preferred_element_type=jnp.float32)
    s = jnp.maximum(s + bcat_ref[...], 0.0)                          # (F_int, rows)

    # psi projection through the MXU, then the sigmoid gate.
    logits = jnp.dot(wp_ref[...], s,
                     preferred_element_type=jnp.float32) + bp_ref[0]  # (1, rows)
    psi = jax.nn.sigmoid(logits)

    out_ref[...] = xp * psi                                          # lane-dense store


# ------------------------------ Wrappers -------------------------------------

def _pick_row_tile(R, F_l, F_g, vmem_budget_bytes=12 << 20):
    """Largest lane-aligned row tile whose double-buffered VMEM footprint stays
    under `vmem_budget_bytes` (safe for v7x's 64 MiB as well as v5e/v6e)."""
    if R % 128 != 0:
        return R                        # small / odd sizes: one tile per batch
    per_col = 4 * 2 * (54 * F_l + F_g + F_l)       # f32, double-buffered in/out
    cap = max(128, min(R, (vmem_budget_bytes // per_col) // 128 * 128))
    t = cap
    while R % t:
        t -= 128
    return t


def _fold_conv_bn(w, b, bn, eps=1e-5):
    """Fold eval-mode BatchNorm into a 1x1 conv.

    Returns channels-first (Cout, Cin) weight and (Cout,) bias."""
    gamma, beta, mean, var = bn
    scale = gamma / jnp.sqrt(var + eps)
    w_f = (w * scale[:, None]).astype(jnp.float32)
    b_f = (scale * (b - mean) + beta).astype(jnp.float32)
    return w_f, b_f


def attention_block_forward(params, g, x, pad=(0, 1, 0, 1)):
    """Mirrors Attention_block.forward(g, x, pad) (inference-mode BatchNorm)."""
    F_l = params["F_l"]
    N, F_g, Hp, Wp = g.shape
    H, W = x.shape[2], x.shape[3]
    wl, wr, hl, hr = pad                 # PyTorch pad order: (Wl, Wr, Hl, Hr)
    assert (Hp, Wp) == (H + hl + hr, W + wl + wr)
    R = Hp * Wp

    # ---- XLA-side layout work only (im2col gather + free reshapes) ----------
    # (N, 2*F_l, H, W) -> (N, 2, F_l, H, W), zero-padded for the 3x3x3 conv.
    x5 = jnp.stack([x[:, :F_l], x[:, F_l:]], axis=1)
    xz = jnp.pad(x5, ((0, 0), (0, 0), (1, 1), (1, 1), (1, 1)))
    # im2col taps with the *downstream* replicate pad folded in, so that
    #   xp[d, h, w] = b3d + sum_k w3d[k] * taps[k][d, h, w]  on the (Hp, Wp) grid.
    taps = []
    for c in range(2):
        for kd in range(3):
            for kh in range(3):
                for kw in range(3):
                    v = xz[:, c, kd:kd + F_l, kh:kh + H, kw:kw + W]   # (N,F_l,H,W)
                    v = jnp.pad(v, ((0, 0), (0, 0), (hl, hr), (wl, wr)),
                                mode="edge")                          # (N,F_l,Hp,Wp)
                    taps.append(v)
    patches = jnp.stack(taps, axis=1).reshape(N, 54, F_l, R)
    g2d = g.reshape(N, F_g, R)                                        # free reshape

    # ---- fold BN; fuse W_g / W_x into a single weight ------------------------
    wg_f, bg_f = _fold_conv_bn(params["wg"], params["bg"], params["bn_g"])
    wx_f, bx_f = _fold_conv_bn(params["wx"], params["bx"], params["bn_x"])
    wp_f, bp_f = _fold_conv_bn(params["wp"], params["bp"], params["bn_p"])
    wcat = jnp.concatenate([wg_f, wx_f], axis=1)                      # (F_int, F_g+F_l)
    bcat = (bg_f + bx_f)[:, None]                                     # (F_int, 1)
    F_int = wcat.shape[0]

    w3d = params["w3d"].reshape(-1).astype(jnp.float32)               # (54,)
    b3d = params["b3d"].reshape(-1).astype(jnp.float32)               # (1,)

    tile = _pick_row_tile(R, F_l, F_g)
    grid = (N, R // tile)

    out2d = pl.pallas_call(
        _fused_attention_kernel,
        out_shape=jax.ShapeDtypeStruct((N, F_l, R), jnp.float32),
        grid=grid,
        in_specs=[
            pl.BlockSpec(memory_space=pltpu.MemorySpace.SMEM),        # w3d (54,)
            pl.BlockSpec(memory_space=pltpu.MemorySpace.SMEM),        # b3d (1,)
            pl.BlockSpec(memory_space=pltpu.MemorySpace.SMEM),        # bp  (1,)
            pl.BlockSpec((pl.Squeezed(), 54, F_l, tile),
                         lambda n, r: (n, 0, 0, r)),
            pl.BlockSpec((pl.Squeezed(), F_g, tile),
                         lambda n, r: (n, 0, r)),
            pl.BlockSpec((F_int, F_g + F_l), lambda n, r: (0, 0)),
            pl.BlockSpec((F_int, 1), lambda n, r: (0, 0)),
            pl.BlockSpec((1, F_int), lambda n, r: (0, 0)),
        ],
        out_specs=pl.BlockSpec((pl.Squeezed(), F_l, tile),
                               lambda n, r: (n, 0, r)),
        compiler_params=pltpu.CompilerParams(
            dimension_semantics=("parallel", "parallel")),
    )(w3d, b3d, bp_f, patches, g2d, wcat, bcat, wp_f)

    return out2d.reshape(N, F_l, Hp, Wp)


# ------------------------------ Params & reference ---------------------------

def init_params(key, F_g, F_l, F_int):
    ks = jax.random.split(key, 10)

    def uconv(k, shape, fan_in):
        bound = 1.0 / float(fan_in) ** 0.5
        return jax.random.uniform(k, shape, jnp.float32, -bound, bound)

    def bn_stats(k, C):
        k1, k2, k3, k4 = jax.random.split(k, 4)
        gamma = 1.0 + 0.1 * jax.random.normal(k1, (C,), jnp.float32)
        beta = 0.1 * jax.random.normal(k2, (C,), jnp.float32)
        mean = 0.1 * jax.random.normal(k3, (C,), jnp.float32)
        var = 1.0 + 0.1 * jax.random.uniform(k4, (C,), jnp.float32)
        return gamma, beta, mean, var

    return {
        "F_l": F_l,
        "w3d": uconv(ks[0], (1, 2, 3, 3, 3), 2 * 27),
        "b3d": uconv(ks[1], (1,), 2 * 27),
        "wg": uconv(ks[2], (F_int, F_g), F_g),
        "bg": uconv(ks[3], (F_int,), F_g),
        "bn_g": bn_stats(ks[4], F_int),
        "wx": uconv(ks[5], (F_int, F_l), F_l),
        "bx": uconv(ks[6], (F_int,), F_l),
        "bn_x": bn_stats(ks[7], F_int),
        "wp": uconv(ks[8], (1, F_int), F_int),
        "bp": uconv(ks[9], (1,), F_int),
        "bn_p": bn_stats(jax.random.fold_in(key, 99), 1),
    }


def reference_forward(params, g, x, pad=(0, 1, 0, 1), eps=1e-5):
    """Pure-JAX (XLA) reference for correctness checking."""
    F_l = params["F_l"]
    x5 = jnp.stack([x[:, :F_l], x[:, F_l:]], axis=1)
    xc = jax.lax.conv_general_dilated(
        x5, params["w3d"], window_strides=(1, 1, 1),
        padding=((1, 1), (1, 1), (1, 1)),
        dimension_numbers=("NCDHW", "OIDHW", "NCDHW"))
    xc = xc[:, 0] + params["b3d"][0]
    wl, wr, hl, hr = pad
    xp = jnp.pad(xc, ((0, 0), (0, 0), (hl, hr), (wl, wr)), mode="edge")

    def conv_bn(h, w, b, bn):
        gamma, beta, mean, var = bn
        scale = gamma / jnp.sqrt(var + eps)
        y = jnp.einsum("nchw,oc->nohw", h, w) + b.reshape(1, -1, 1, 1)
        return y * scale.reshape(1, -1, 1, 1) + (beta - mean * scale).reshape(1, -1, 1, 1)

    g1 = conv_bn(g, params["wg"], params["bg"], params["bn_g"])
    x1 = conv_bn(xp, params["wx"], params["bx"], params["bn_x"])
    s = jnp.maximum(g1 + x1, 0.0)
    psi = jax.nn.sigmoid(conv_bn(s, params["wp"], params["bp"], params["bn_p"]))
    return xp * psi


# --------------------------------- Main ---------------------------------------

if __name__ == "__main__":
    F_g, F_l, F_int = 8, 4, 16
    N, H, W = 2, 15, 15                      # pad=(0,1,0,1) -> g spatial is 16x16

    key = jax.random.PRNGKey(0)
    kg, kx, kp = jax.random.split(key, 3)
    g = jax.random.normal(kg, (N, F_g, H + 1, W + 1), jnp.float32)
    x = jax.random.normal(kx, (N, 2 * F_l, H, W), jnp.float32)
    params = init_params(kp, F_g, F_l, F_int)

    out = jax.block_until_ready(attention_block_forward(params, g, x))
    ref = reference_forward(params, g, x)
    assert out.shape == (N, F_l, H + 1, W + 1), out.shape
    max_err = float(jnp.max(jnp.abs(out - ref)))
    assert jnp.allclose(out, ref, atol=2e-4, rtol=2e-4), f"max abs err {max_err}"
    print("KERNEL_OK")
</pallas_src>

<mosaic_0001>
module attributes {stable_mosaic.version = 11 : i64} {
  func.func @_fused_attention_kernel(%arg0: i32, %arg1: i32, %arg2: memref<54xf32, #tpu.memory_space<smem>>, %arg3: memref<1xf32, #tpu.memory_space<smem>>, %arg4: memref<1xf32, #tpu.memory_space<smem>>, %arg5: memref<1x54x4x256xf32, #tpu.memory_space<vmem>>, %arg6: memref<1x8x256xf32, #tpu.memory_space<vmem>>, %arg7: memref<16x12xf32, #tpu.memory_space<vmem>>, %arg8: memref<16x1xf32, #tpu.memory_space<vmem>>, %arg9: memref<1x16xf32, #tpu.memory_space<vmem>>, %arg10: memref<1x4x256xf32, #tpu.memory_space<vmem>>) attributes {dimension_semantics = [#tpu.dimension_semantics<parallel>, #tpu.dimension_semantics<parallel>], iteration_bounds = array<i64: 2, 1>, scalar_prefetch = 0 : i64, scratch_operands = 0 : i64, tpu.core_type = #tpu.core_type<tc>, window_params = [{transform_indices = @transform_0, window_bounds = array<i64: 54>}, {transform_indices = @transform_1, window_bounds = array<i64: 1>}, {transform_indices = @transform_2, window_bounds = array<i64: 1>}, {transform_indices = @transform_3, window_bounds = array<i64: 1, 54, 4, 256>}, {transform_indices = @transform_4, window_bounds = array<i64: 1, 8, 256>}, {pipeline_mode = #tpu.pipeline_mode<synchronous>, transform_indices = @transform_5, window_bounds = array<i64: 16, 12>}, {pipeline_mode = #tpu.pipeline_mode<synchronous>, transform_indices = @transform_6, window_bounds = array<i64: 16, 1>}, {pipeline_mode = #tpu.pipeline_mode<synchronous>, transform_indices = @transform_7, window_bounds = array<i64: 1, 16>}, {transform_indices = @transform_8, window_bounds = array<i64: 1, 4, 256>}]} {
    %c0 = arith.constant 0 : index
    %0 = memref.load %arg3[%c0] : memref<1xf32, #tpu.memory_space<smem>>
    %1 = vector.broadcast %0 : f32 to vector<4x256xf32>
    %c0_0 = arith.constant 0 : index
    %2 = memref.load %arg2[%c0_0] : memref<54xf32, #tpu.memory_space<smem>>
    %c0_1 = arith.constant 0 : index
    %c0_2 = arith.constant 0 : index
    %c0_3 = arith.constant 0 : index
    %c0_4 = arith.constant 0 : index
    %3 = vector.load %arg5[%c0_1, %c0_2, %c0_3, %c0_4] : memref<1x54x4x256xf32, #tpu.memory_space<vmem>>, vector<1x1x4x256xf32>
    %4 = vector.shape_cast %3 : vector<1x1x4x256xf32> to vector<4x256xf32>
    %5 = vector.broadcast %2 : f32 to vector<4x256xf32>
    %6 = arith.mulf %5, %4 : vector<4x256xf32>
    %7 = arith.addf %1, %6 : vector<4x256xf32>
    %c1 = arith.constant 1 : index
    %8 = memref.load %arg2[%c1] : memref<54xf32, #tpu.memory_space<smem>>
    %c0_5 = arith.constant 0 : index
    %c1_6 = arith.constant 1 : index
    %c0_7 = arith.constant 0 : index
    %c0_8 = arith.constant 0 : index
    %9 = vector.load %arg5[%c0_5, %c1_6, %c0_7, %c0_8] : memref<1x54x4x256xf32, #tpu.memory_space<vmem>>, vector<1x1x4x256xf32>
    %10 = vector.shape_cast %9 : vector<1x1x4x256xf32> to vector<4x256xf32>
    %11 = vector.broadcast %8 : f32 to vector<4x256xf32>
    %12 = arith.mulf %11, %10 : vector<4x256xf32>
    %13 = arith.addf %7, %12 : vector<4x256xf32>
    %c2 = arith.constant 2 : index
    %14 = memref.load %arg2[%c2] : memref<54xf32, #tpu.memory_space<smem>>
    %c0_9 = arith.constant 0 : index
    %c2_10 = arith.constant 2 : index
    %c0_11 = arith.constant 0 : index
    %c0_12 = arith.constant 0 : index
    %15 = vector.load %arg5[%c0_9, %c2_10, %c0_11, %c0_12] : memref<1x54x4x256xf32, #tpu.memory_space<vmem>>, vector<1x1x4x256xf32>
    %16 = vector.shape_cast %15 : vector<1x1x4x256xf32> to vector<4x256xf32>
    %17 = vector.broadcast %14 : f32 to vector<4x256xf32>
    %18 = arith.mulf %17, %16 : vector<4x256xf32>
    %19 = arith.addf %13, %18 : vector<4x256xf32>
    %c3 = arith.constant 3 : index
    %20 = memref.load %arg2[%c3] : memref<54xf32, #tpu.memory_space<smem>>
    %c0_13 = arith.constant 0 : index
    %c3_14 = arith.constant 3 : index
    %c0_15 = arith.constant 0 : index
    %c0_16 = arith.constant 0 : index
    %21 = vector.load %arg5[%c0_13, %c3_14, %c0_15, %c0_16] : memref<1x54x4x256xf32, #tpu.memory_space<vmem>>, vector<1x1x4x256xf32>
    %22 = vector.shape_cast %21 : vector<1x1x4x256xf32> to vector<4x256xf32>
    %23 = vector.broadcast %20 : f32 to vector<4x256xf32>
    %24 = arith.mulf %23, %22 : vector<4x256xf32>
    %25 = arith.addf %19, %24 : vector<4x256xf32>
    %c4 = arith.constant 4 : index
    %26 = memref.load %arg2[%c4] : memref<54xf32, #tpu.memory_space<smem>>
    %c0_17 = arith.constant 0 : index
    %c4_18 = arith.constant 4 : index
    %c0_19 = arith.constant 0 : index
    %c0_20 = arith.constant 0 : index
    %27 = vector.load %arg5[%c0_17, %c4_18, %c0_19, %c0_20] : memref<1x54x4x256xf32, #tpu.memory_space<vmem>>, vector<1x1x4x256xf32>
    %28 = vector.shape_cast %27 : vector<1x1x4x256xf32> to vector<4x256xf32>
    %29 = vector.broadcast %26 : f32 to vector<4x256xf32>
    %30 = arith.mulf %29, %28 : vector<4x256xf32>
    %31 = arith.addf %25, %30 : vector<4x256xf32>
    %c5 = arith.constant 5 : index
    %32 = memref.load %arg2[%c5] : memref<54xf32, #tpu.memory_space<smem>>
    %c0_21 = arith.constant 0 : index
    %c5_22 = arith.constant 5 : index
    %c0_23 = arith.constant 0 : index
    %c0_24 = arith.constant 0 : index
    %33 = vector.load %arg5[%c0_21, %c5_22, %c0_23, %c0_24] : memref<1x54x4x256xf32, #tpu.memory_space<vmem>>, vector<1x1x4x256xf32>
    %34 = vector.shape_cast %33 : vector<1x1x4x256xf32> to vector<4x256xf32>
    %35 = vector.broadcast %32 : f32 to vector<4x256xf32>
    %36 = arith.mulf %35, %34 : vector<4x256xf32>
    %37 = arith.addf %31, %36 : vector<4x256xf32>
    %c6 = arith.constant 6 : index
    %38 = memref.load %arg2[%c6] : memref<54xf32, #tpu.memory_space<smem>>
    %c0_25 = arith.constant 0 : index
    %c6_26 = arith.constant 6 : index
    %c0_27 = arith.constant 0 : index
    %c0_28 = arith.constant 0 : index
    %39 = vector.load %arg5[%c0_25, %c6_26, %c0_27, %c0_28] : memref<1x54x4x256xf32, #tpu.memory_space<vmem>>, vector<1x1x4x256xf32>
    %40 = vector.shape_cast %39 : vector<1x1x4x256xf32> to vector<4x256xf32>
    %41 = vector.broadcast %38 : f32 to vector<4x256xf32>
    %42 = arith.mulf %41, %40 : vector<4x256xf32>
    %43 = arith.addf %37, %42 : vector<4x256xf32>
    %c7 = arith.constant 7 : index
    %44 = memref.load %arg2[%c7] : memref<54xf32, #tpu.memory_space<smem>>
    %c0_29 = arith.constant 0 : index
    %c7_30 = arith.constant 7 : index
    %c0_31 = arith.constant 0 : index
    %c0_32 = arith.constant 0 : index
    %45 = vector.load %arg5[%c0_29, %c7_30, %c0_31, %c0_32] : memref<1x54x4x256xf32, #tpu.memory_space<vmem>>, vector<1x1x4x256xf32>
    %46 = vector.shape_cast %45 : vector<1x1x4x256xf32> to vector<4x256xf32>
    %47 = vector.broadcast %44 : f32 to vector<4x256xf32>
    %48 = arith.mulf %47, %46 : vector<4x256xf32>
    %49 = arith.addf %43, %48 : vector<4x256xf32>
    %c8 = arith.constant 8 : index
    %50 = memref.load %arg2[%c8] : memref<54xf32, #tpu.memory_space<smem>>
    %c0_33 = arith.constant 0 : index
    %c8_34 = arith.constant 8 : index
    %c0_35 = arith.constant 0 : index
    %c0_36 = arith.constant 0 : index
    %51 = vector.load %arg5[%c0_33, %c8_34, %c0_35, %c0_36] : memref<1x54x4x256xf32, #tpu.memory_space<vmem>>, vector<1x1x4x256xf32>
    %52 = vector.shape_cast %51 : vector<1x1x4x256xf32> to vector<4x256xf32>
    %53 = vector.broadcast %50 : f32 to vector<4x256xf32>
    %54 = arith.mulf %53, %52 : vector<4x256xf32>
    %55 = arith.addf %49, %54 : vector<4x256xf32>
    %c9 = arith.constant 9 : index
    %56 = memref.load %arg2[%c9] : memref<54xf32, #tpu.memory_space<smem>>
    %c0_37 = arith.constant 0 : index
    %c9_38 = arith.constant 9 : index
    %c0_39 = arith.constant 0 : index
    %c0_40 = arith.constant 0 : index
    %57 = vector.load %arg5[%c0_37, %c9_38, %c0_39, %c0_40] : memref<1x54x4x256xf32, #tpu.memory_space<vmem>>, vector<1x1x4x256xf32>
    %58 = vector.shape_cast %57 : vector<1x1x4x256xf32> to vector<4x256xf32>
    %59 = vector.broadcast %56 : f32 to vector<4x256xf32>
    %60 = arith.mulf %59, %58 : vector<4x256xf32>
    %61 = arith.addf %55, %60 : vector<4x256xf32>
    %c10 = arith.constant 10 : index
    %62 = memref.load %arg2[%c10] : memref<54xf32, #tpu.memory_space<smem>>
    %c0_41 = arith.constant 0 : index
    %c10_42 = arith.constant 10 : index
    %c0_43 = arith.constant 0 : index
    %c0_44 = arith.constant 0 : index
    %63 = vector.load %arg5[%c0_41, %c10_42, %c0_43, %c0_44] : memref<1x54x4x256xf32, #tpu.memory_space<vmem>>, vector<1x1x4x256xf32>
    %64 = vector.shape_cast %63 : vector<1x1x4x256xf32> to vector<4x256xf32>
    %65 = vector.broadcast %62 : f32 to vector<4x256xf32>
    %66 = arith.mulf %65, %64 : vector<4x256xf32>
    %67 = arith.addf %61, %66 : vector<4x256xf32>
    %c11 = arith.constant 11 : index
    %68 = memref.load %arg2[%c11] : memref<54xf32, #tpu.memory_space<smem>>
    %c0_45 = arith.constant 0 : index
    %c11_46 = arith.constant 11 : index
    %c0_47 = arith.constant 0 : index
    %c0_48 = arith.constant 0 : index
    %69 = vector.load %arg5[%c0_45, %c11_46, %c0_47, %c0_48] : memref<1x54x4x256xf32, #tpu.memory_space<vmem>>, vector<1x1x4x256xf32>
    %70 = vector.shape_cast %69 : vector<1x1x4x256xf32> to vector<4x256xf32>
    %71 = vector.broadcast %68 : f32 to vector<4x256xf32>
    %72 = arith.mulf %71, %70 : vector<4x256xf32>
    %73 = arith.addf %67, %72 : vector<4x256xf32>
    %c12 = arith.constant 12 : index
    %74 = memref.load %arg2[%c12] : memref<54xf32, #tpu.memory_space<smem>>
    %c0_49 = arith.constant 0 : index
    %c12_50 = arith.constant 12 : index
    %c0_51 = arith.constant 0 : index
    %c0_52 = arith.constant 0 : index
    %75 = vector.load %arg5[%c0_49, %c12_50, %c0_51, %c0_52] : memref<1x54x4x256xf32, #tpu.memory_space<vmem>>, vector<1x1x4x256xf32>
    %76 = vector.shape_cast %75 : vector<1x1x4x256xf32> to vector<4x256xf32>
    %77 = vector.broadcast %74 : f32 to vector<4x256xf32>
    %78 = arith.mulf %77, %76 : vector<4x256xf32>
    %79 = arith.addf %73, %78 : vector<4x256xf32>
    %c13 = arith.constant 13 : index
    %80 = memref.load %arg2[%c13] : memref<54xf32, #tpu.memory_space<smem>>
    %c0_53 = arith.constant 0 : index
    %c13_54 = arith.constant 13 : index
    %c0_55 = arith.constant 0 : index
    %c0_56 = arith.constant 0 : index
    %81 = vector.load %arg5[%c0_53, %c13_54, %c0_55, %c0_56] : memref<1x54x4x256xf32, #tpu.memory_space<vmem>>, vector<1x1x4x256xf32>
    %82 = vector.shape_cast %81 : vector<1x1x4x256xf32> to vector<4x256xf32>
    %83 = vector.broadcast %80 : f32 to vector<4x256xf32>
    %84 = arith.mulf %83, %82 : vector<4x256xf32>
    %85 = arith.addf %79, %84 : vector<4x256xf32>
    %c14 = arith.constant 14 : index
    %86 = memref.load %arg2[%c14] : memref<54xf32, #tpu.memory_space<smem>>
    %c0_57 = arith.constant 0 : index
    %c14_58 = arith.constant 14 : index
    %c0_59 = arith.constant 0 : index
    %c0_60 = arith.constant 0 : index
    %87 = vector.load %arg5[%c0_57, %c14_58, %c0_59, %c0_60] : memref<1x54x4x256xf32, #tpu.memory_space<vmem>>, vector<1x1x4x256xf32>
    %88 = vector.shape_cast %87 : vector<1x1x4x256xf32> to vector<4x256xf32>
    %89 = vector.broadcast %86 : f32 to vector<4x256xf32>
    %90 = arith.mulf %89, %88 : vector<4x256xf32>
    %91 = arith.addf %85, %90 : vector<4x256xf32>
    %c15 = arith.constant 15 : index
    %92 = memref.load %arg2[%c15] : memref<54xf32, #tpu.memory_space<smem>>
    %c0_61 = arith.constant 0 : index
    %c15_62 = arith.constant 15 : index
    %c0_63 = arith.constant 0 : index
    %c0_64 = arith.constant 0 : index
    %93 = vector.load %arg5[%c0_61, %c15_62, %c0_63, %c0_64] : memref<1x54x4x256xf32, #tpu.memory_space<vmem>>, vector<1x1x4x256xf32>
    %94 = vector.shape_cast %93 : vector<1x1x4x256xf32> to vector<4x256xf32>
    %95 = vector.broadcast %92 : f32 to vector<4x256xf32>
    %96 = arith.mulf %95, %94 : vector<4x256xf32>
    %97 = arith.addf %91, %96 : vector<4x256xf32>
    %c16 = arith.constant 16 : index
    %98 = memref.load %arg2[%c16] : memref<54xf32, #tpu.memory_space<smem>>
    %c0_65 = arith.constant 0 : index
    %c16_66 = arith.constant 16 : index
    %c0_67 = arith.constant 0 : index
    %c0_68 = arith.constant 0 : index
    %99 = vector.load %arg5[%c0_65, %c16_66, %c0_67, %c0_68] : memref<1x54x4x256xf32, #tpu.memory_space<vmem>>, vector<1x1x4x256xf32>
    %100 = vector.shape_cast %99 : vector<1x1x4x256xf32> to vector<4x256xf32>
    %101 = vector.broadcast %98 : f32 to vector<4x256xf32>
    %102 = arith.mulf %101, %100 : vector<4x256xf32>
    %103 = arith.addf %97, %102 : vector<4x256xf32>
    %c17 = arith.constant 17 : index
    %104 = memref.load %arg2[%c17] : memref<54xf32, #tpu.memory_space<smem>>
    %c0_69 = arith.constant 0 : index
    %c17_70 = arith.constant 17 : index
    %c0_71 = arith.constant 0 : index
    %c0_72 = arith.constant 0 : index
    %105 = vector.load %arg5[%c0_69, %c17_70, %c0_71, %c0_72] : memref<1x54x4x256xf32, #tpu.memory_space<vmem>>, vector<1x1x4x256xf32>
    %106 = vector.shape_cast %105 : vector<1x1x4x256xf32> to vector<4x256xf32>
    %107 = vector.broadcast %104 : f32 to vector<4x256xf32>
    %108 = arith.mulf %107, %106 : vector<4x256xf32>
    %109 = arith.addf %103, %108 : vector<4x256xf32>
    %c18 = arith.constant 18 : index
    %110 = memref.load %arg2[%c18] : memref<54xf32, #tpu.memory_space<smem>>
    %c0_73 = arith.constant 0 : index
    %c18_74 = arith.constant 18 : index
    %c0_75 = arith.constant 0 : index
    %c0_76 = arith.constant 0 : index
    %111 = vector.load %arg5[%c0_73, %c18_74, %c0_75, %c0_76] : memref<1x54x4x256xf32, #tpu.memory_space<vmem>>, vector<1x1x4x256xf32>
    %112 = vector.shape_cast %111 : vector<1x1x4x256xf32> to vector<4x256xf32>
    %113 = vector.broadcast %110 : f32 to vector<4x256xf32>
    %114 = arith.mulf %113, %112 : vector<4x256xf32>
    %115 = arith.addf %109, %114 : vector<4x256xf32>
    %c19 = arith.constant 19 : index
    %116 = memref.load %arg2[%c19] : memref<54xf32, #tpu.memory_space<smem>>
    %c0_77 = arith.constant 0 : index
    %c19_78 = arith.constant 19 : index
    %c0_79 = arith.constant 0 : index
    %c0_80 = arith.constant 0 : index
    %117 = vector.load %arg5[%c0_77, %c19_78, %c0_79, %c0_80] : memref<1x54x4x256xf32, #tpu.memory_space<vmem>>, vector<1x1x4x256xf32>
    %118 = vector.shape_cast %117 : vector<1x1x4x256xf32> to vector<4x256xf32>
    %119 = vector.broadcast %116 : f32 to vector<4x256xf32>
    %120 = arith.mulf %119, %118 : vector<4x256xf32>
    %121 = arith.addf %115, %120 : vector<4x256xf32>
    %c20 = arith.constant 20 : index
    %122 = memref.load %arg2[%c20] : memref<54xf32, #tpu.memory_space<smem>>
    %c0_81 = arith.constant 0 : index
    %c20_82 = arith.constant 20 : index
    %c0_83 = arith.constant 0 : index
    %c0_84 = arith.constant 0 : index
    %123 = vector.load %arg5[%c0_81, %c20_82, %c0_83, %c0_84] : memref<1x54x4x256xf32, #tpu.memory_space<vmem>>, vector<1x1x4x256xf32>
    %124 = vector.shape_cast %123 : vector<1x1x4x256xf32> to vector<4x256xf32>
    %125 = vector.broadcast %122 : f32 to vector<4x256xf32>
    %126 = arith.mulf %125, %124 : vector<4x256xf32>
    %127 = arith.addf %121, %126 : vector<4x256xf32>
    %c21 = arith.constant 21 : index
    %128 = memref.load %arg2[%c21] : memref<54xf32, #tpu.memory_space<smem>>
    %c0_85 = arith.constant 0 : index
    %c21_86 = arith.constant 21 : index
    %c0_87 = arith.constant 0 : index
    %c0_88 = arith.constant 0 : index
    %129 = vector.load %arg5[%c0_85, %c21_86, %c0_87, %c0_88] : memref<1x54x4x256xf32, #tpu.memory_space<vmem>>, vector<1x1x4x256xf32>
    %130 = vector.shape_cast %129 : vector<1x1x4x256xf32> to vector<4x256xf32>
    %131 = vector.broadcast %128 : f32 to vector<4x256xf32>
    %132 = arith.mulf %131, %130 : vector<4x256xf32>
    %133 = arith.addf %127, %132 : vector<4x256xf32>
    %c22 = arith.constant 22 : index
    %134 = memref.load %arg2[%c22] : memref<54xf32, #tpu.memory_space<smem>>
    %c0_89 = arith.constant 0 : index
    %c22_90 = arith.constant 22 : index
    %c0_91 = arith.constant 0 : index
    %c0_92 = arith.constant 0 : index
    %135 = vector.load %arg5[%c0_89, %c22_90, %c0_91, %c0_92] : memref<1x54x4x256xf32, #tpu.memory_space<vmem>>, vector<1x1x4x256xf32>
    %136 = vector.shape_cast %135 : vector<1x1x4x256xf32> to vector<4x256xf32>
    %137 = vector.broadcast %134 : f32 to vector<4x256xf32>
    %138 = arith.mulf %137, %136 : vector<4x256xf32>
    %139 = arith.addf %133, %138 : vector<4x256xf32>
    %c23 = arith.constant 23 : index
    %140 = memref.load %arg2[%c23] : memref<54xf32, #tpu.memory_space<smem>>
    %c0_93 = arith.constant 0 : index
    %c23_94 = arith.constant 23 : index
    %c0_95 = arith.constant 0 : index
    %c0_96 = arith.constant 0 : index
    %141 = vector.load %arg5[%c0_93, %c23_94, %c0_95, %c0_96] : memref<1x54x4x256xf32, #tpu.memory_space<vmem>>, vector<1x1x4x256xf32>
    %142 = vector.shape_cast %141 : vector<1x1x4x256xf32> to vector<4x256xf32>
    %143 = vector.broadcast %140 : f32 to vector<4x256xf32>
    %144 = arith.mulf %143, %142 : vector<4x256xf32>
    %145 = arith.addf %139, %144 : vector<4x256xf32>
    %c24 = arith.constant 24 : index
    %146 = memref.load %arg2[%c24] : memref<54xf32, #tpu.memory_space<smem>>
    %c0_97 = arith.constant 0 : index
    %c24_98 = arith.constant 24 : index
    %c0_99 = arith.constant 0 : index
    %c0_100 = arith.constant 0 : index
    %147 = vector.load %arg5[%c0_97, %c24_98, %c0_99, %c0_100] : memref<1x54x4x256xf32, #tpu.memory_space<vmem>>, vector<1x1x4x256xf32>
    %148 = vector.shape_cast %147 : vector<1x1x4x256xf32> to vector<4x256xf32>
    %149 = vector.broadcast %146 : f32 to vector<4x256xf32>
    %150 = arith.mulf %149, %148 : vector<4x256xf32>
    %151 = arith.addf %145, %150 : vector<4x256xf32>
    %c25 = arith.constant 25 : index
    %152 = memref.load %arg2[%c25] : memref<54xf32, #tpu.memory_space<smem>>
    %c0_101 = arith.constant 0 : index
    %c25_102 = arith.constant 25 : index
    %c0_103 = arith.constant 0 : index
    %c0_104 = arith.constant 0 : index
    %153 = vector.load %arg5[%c0_101, %c25_102, %c0_103, %c0_104] : memref<1x54x4x256xf32, #tpu.memory_space<vmem>>, vector<1x1x4x256xf32>
    %154 = vector.shape_cast %153 : vector<1x1x4x256xf32> to vector<4x256xf32>
    %155 = vector.broadcast %152 : f32 to vector<4x256xf32>
    %156 = arith.mulf %155, %154 : vector<4x256xf32>
    %157 = arith.addf %151, %156 : vector<4x256xf32>
    %c26 = arith.constant 26 : index
    %158 = memref.load %arg2[%c26] : memref<54xf32, #tpu.memory_space<smem>>
    %c0_105 = arith.constant 0 : index
    %c26_106 = arith.constant 26 : index
    %c0_107 = arith.constant 0 : index
    %c0_108 = arith.constant 0 : index
    %159 = vector.load %arg5[%c0_105, %c26_106, %c0_107, %c0_108] : memref<1x54x4x256xf32, #tpu.memory_space<vmem>>, vector<1x1x4x256xf32>
    %160 = vector.shape_cast %159 : vector<1x1x4x256xf32> to vector<4x256xf32>
    %161 = vector.broadcast %158 : f32 to vector<4x256xf32>
    %162 = arith.mulf %161, %160 : vector<4x256xf32>
    %163 = arith.addf %157, %162 : vector<4x256xf32>
    %c27 = arith.constant 27 : index
    %164 = memref.load %arg2[%c27] : memref<54xf32, #tpu.memory_space<smem>>
    %c0_109 = arith.constant 0 : index
    %c27_110 = arith.constant 27 : index
    %c0_111 = arith.constant 0 : index
    %c0_112 = arith.constant 0 : index
    %165 = vector.load %arg5[%c0_109, %c27_110, %c0_111, %c0_112] : memref<1x54x4x256xf32, #tpu.memory_space<vmem>>, vector<1x1x4x256xf32>
    %166 = vector.shape_cast %165 : vector<1x1x4x256xf32> to vector<4x256xf32>
    %167 = vector.broadcast %164 : f32 to vector<4x256xf32>
    %168 = arith.mulf %167, %166 : vector<4x256xf32>
    %169 = arith.addf %163, %168 : vector<4x256xf32>
    %c28 = arith.constant 28 : index
    %170 = memref.load %arg2[%c28] : memref<54xf32, #tpu.memory_space<smem>>
    %c0_113 = arith.constant 0 : index
    %c28_114 = arith.constant 28 : index
    %c0_115 = arith.constant 0 : index
    %c0_116 = arith.constant 0 : index
    %171 = vector.load %arg5[%c0_113, %c28_114, %c0_115, %c0_116] : memref<1x54x4x256xf32, #tpu.memory_space<vmem>>, vector<1x1x4x256xf32>
    %172 = vector.shape_cast %171 : vector<1x1x4x256xf32> to vector<4x256xf32>
    %173 = vector.broadcast %170 : f32 to vector<4x256xf32>
    %174 = arith.mulf %173, %172 : vector<4x256xf32>
    %175 = arith.addf %169, %174 : vector<4x256xf32>
    %c29 = arith.constant 29 : index
    %176 = memref.load %arg2[%c29] : memref<54xf32, #tpu.memory_space<smem>>
    %c0_117 = arith.constant 0 : index
    %c29_118 = arith.constant 29 : index
    %c0_119 = arith.constant 0 : index
    %c0_120 = arith.constant 0 : index
    %177 = vector.load %arg5[%c0_117, %c29_118, %c0_119, %c0_120] : memref<1x54x4x256xf32, #tpu.memory_space<vmem>>, vector<1x1x4x256xf32>
    %178 = vector.shape_cast %177 : vector<1x1x4x256xf32> to vector<4x256xf32>
    %179 = vector.broadcast %176 : f32 to vector<4x256xf32>
    %180 = arith.mulf %179, %178 : vector<4x256xf32>
    %181 = arith.addf %175, %180 : vector<4x256xf32>
    %c30 = arith.constant 30 : index
    %182 = memref.load %arg2[%c30] : memref<54xf32, #tpu.memory_space<smem>>
    %c0_121 = arith.constant 0 : index
    %c30_122 = arith.constant 30 : index
    %c0_123 = arith.constant 0 : index
    %c0_124 = arith.constant 0 : index
    %183 = vector.load %arg5[%c0_121, %c30_122, %c0_123, %c0_124] : memref<1x54x4x256xf32, #tpu.memory_space<vmem>>, vector<1x1x4x256xf32>
    %184 = vector.shape_cast %183 : vector<1x1x4x256xf32> to vector<4x256xf32>
    %185 = vector.broadcast %182 : f32 to vector<4x256xf32>
    %186 = arith.mulf %185, %184 : vector<4x256xf32>
    %187 = arith.addf %181, %186 : vector<4x256xf32>
    %c31 = arith.constant 31 : index
    %188 = memref.load %arg2[%c31] : memref<54xf32, #tpu.memory_space<smem>>
    %c0_125 = arith.constant 0 : index
    %c31_126 = arith.constant 31 : index
    %c0_127 = arith.constant 0 : index
    %c0_128 = arith.constant 0 : index
    %189 = vector.load %arg5[%c0_125, %c31_126, %c0_127, %c0_128] : memref<1x54x4x256xf32, #tpu.memory_space<vmem>>, vector<1x1x4x256xf32>
    %190 = vector.shape_cast %189 : vector<1x1x4x256xf32> to vector<4x256xf32>
    %191 = vector.broadcast %188 : f32 to vector<4x256xf32>
    %192 = arith.mulf %191, %190 : vector<4x256xf32>
    %193 = arith.addf %187, %192 : vector<4x256xf32>
    %c32 = arith.constant 32 : index
    %194 = memref.load %arg2[%c32] : memref<54xf32, #tpu.memory_space<smem>>
    %c0_129 = arith.constant 0 : index
    %c32_130 = arith.constant 32 : index
    %c0_131 = arith.constant 0 : index
    %c0_132 = arith.constant 0 : index
    %195 = vector.load %arg5[%c0_129, %c32_130, %c0_131, %c0_132] : memref<1x54x4x256xf32, #tpu.memory_space<vmem>>, vector<1x1x4x256xf32>
    %196 = vector.shape_cast %195 : vector<1x1x4x256xf32> to vector<4x256xf32>
    %197 = vector.broadcast %194 : f32 to vector<4x256xf32>
    %198 = arith.mulf %197, %196 : vector<4x256xf32>
    %199 = arith.addf %193, %198 : vector<4x256xf32>
    %c33 = arith.constant 33 : index
    %200 = memref.load %arg2[%c33] : memref<54xf32, #tpu.memory_space<smem>>
    %c0_133 = arith.constant 0 : index
    %c33_134 = arith.constant 33 : index
    %c0_135 = arith.constant 0 : index
    %c0_136 = arith.constant 0 : index
    %201 = vector.load %arg5[%c0_133, %c33_134, %c0_135, %c0_136] : memref<1x54x4x256xf32, #tpu.memory_space<vmem>>, vector<1x1x4x256xf32>
    %202 = vector.shape_cast %201 : vector<1x1x4x256xf32> to vector<4x256xf32>
    %203 = vector.broadcast %200 : f32 to vector<4x256xf32>
    %204 = arith.mulf %203, %202 : vector<4x256xf32>
    %205 = arith.addf %199, %204 : vector<4x256xf32>
    %c34 = arith.constant 34 : index
    %206 = memref.load %arg2[%c34] : memref<54xf32, #tpu.memory_space<smem>>
    %c0_137 = arith.constant 0 : index
    %c34_138 = arith.constant 34 : index
    %c0_139 = arith.constant 0 : index
    %c0_140 = arith.constant 0 : index
    %207 = vector.load %arg5[%c0_137, %c34_138, %c0_139, %c0_140] : memref<1x54x4x256xf32, #tpu.memory_space<vmem>>, vector<1x1x4x256xf32>
    %208 = vector.shape_cast %207 : vector<1x1x4x256xf32> to vector<4x256xf32>
    %209 = vector.broadcast %206 : f32 to vector<4x256xf32>
    %210 = arith.mulf %209, %208 : vector<4x256xf32>
    %211 = arith.addf %205, %210 : vector<4x256xf32>
    %c35 = arith.constant 35 : index
    %212 = memref.load %arg2[%c35] : memref<54xf32, #tpu.memory_space<smem>>
    %c0_141 = arith.constant 0 : index
    %c35_142 = arith.constant 35 : index
    %c0_143 = arith.constant 0 : index
    %c0_144 = arith.constant 0 : index
    %213 = vector.load %arg5[%c0_141, %c35_142, %c0_143, %c0_144] : memref<1x54x4x256xf32, #tpu.memory_space<vmem>>, vector<1x1x4x256xf32>
    %214 = vector.shape_cast %213 : vector<1x1x4x256xf32> to vector<4x256xf32>
    %215 = vector.broadcast %212 : f32 to vector<4x256xf32>
    %216 = arith.mulf %215, %214 : vector<4x256xf32>
    %217 = arith.addf %211, %216 : vector<4x256xf32>
    %c36 = arith.constant 36 : index
    %218 = memref.load %arg2[%c36] : memref<54xf32, #tpu.memory_space<smem>>
    %c0_145 = arith.constant 0 : index
    %c36_146 = arith.constant 36 : index
    %c0_147 = arith.constant 0 : index
    %c0_148 = arith.constant 0 : index
    %219 = vector.load %arg5[%c0_145, %c36_146, %c0_147, %c0_148] : memref<1x54x4x256xf32, #tpu.memory_space<vmem>>, vector<1x1x4x256xf32>
    %220 = vector.shape_cast %219 : vector<1x1x4x256xf32> to vector<4x256xf32>
    %221 = vector.broadcast %218 : f32 to vector<4x256xf32>
    %222 = arith.mulf %221, %220 : vector<4x256xf32>
    %223 = arith.addf %217, %222 : vector<4x256xf32>
    %c37 = arith.constant 37 : index
    %224 = memref.load %arg2[%c37] : memref<54xf32, #tpu.memory_space<smem>>
    %c0_149 = arith.constant 0 : index
    %c37_150 = arith.constant 37 : index
    %c0_151 = arith.constant 0 : index
    %c0_152 = arith.constant 0 : index
    %225 = vector.load %arg5[%c0_149, %c37_150, %c0_151, %c0_152] : memref<1x54x4x256xf32, #tpu.memory_space<vmem>>, vector<1x1x4x256xf32>
    %226 = vector.shape_cast %225 : vector<1x1x4x256xf32> to vector<4x256xf32>
    %227 = vector.broadcast %224 : f32 to vector<4x256xf32>
    %228 = arith.mulf %227, %226 : vector<4x256xf32>
    %229 = arith.addf %223, %228 : vector<4x256xf32>
    %c38 = arith.constant 38 : index
    %230 = memref.load %arg2[%c38] : memref<54xf32, #tpu.memory_space<smem>>
    %c0_153 = arith.constant 0 : index
    %c38_154 = arith.constant 38 : index
    %c0_155 = arith.constant 0 : index
    %c0_156 = arith.constant 0 : index
    %231 = vector.load %arg5[%c0_153, %c38_154, %c0_155, %c0_156] : memref<1x54x4x256xf32, #tpu.memory_space<vmem>>, vector<1x1x4x256xf32>
    %232 = vector.shape_cast %231 : vector<1x1x4x256xf32> to vector<4x256xf32>
    %233 = vector.broadcast %230 : f32 to vector<4x256xf32>
    %234 = arith.mulf %233, %232 : vector<4x256xf32>
    %235 = arith.addf %229, %234 : vector<4x256xf32>
    %c39 = arith.constant 39 : index
    %236 = memref.load %arg2[%c39] : memref<54xf32, #tpu.memory_space<smem>>
    %c0_157 = arith.constant 0 : index
    %c39_158 = arith.constant 39 : index
    %c0_159 = arith.constant 0 : index
    %c0_160 = arith.constant 0 : index
    %237 = vector.load %arg5[%c0_157, %c39_158, %c0_159, %c0_160] : memref<1x54x4x256xf32, #tpu.memory_space<vmem>>, vector<1x1x4x256xf32>
    %238 = vector.shape_cast %237 : vector<1x1x4x256xf32> to vector<4x256xf32>
    %239 = vector.broadcast %236 : f32 to vector<4x256xf32>
    %240 = arith.mulf %239, %238 : vector<4x256xf32>
    %241 = arith.addf %235, %240 : vector<4x256xf32>
    %c40 = arith.constant 40 : index
    %242 = memref.load %arg2[%c40] : memref<54xf32, #tpu.memory_space<smem>>
    %c0_161 = arith.constant 0 : index
    %c40_162 = arith.constant 40 : index
    %c0_163 = arith.constant 0 : index
    %c0_164 = arith.constant 0 : index
    %243 = vector.load %arg5[%c0_161, %c40_162, %c0_163, %c0_164] : memref<1x54x4x256xf32, #tpu.memory_space<vmem>>, vector<1x1x4x256xf32>
    %244 = vector.shape_cast %243 : vector<1x1x4x256xf32> to vector<4x256xf32>
    %245 = vector.broadcast %242 : f32 to vector<4x256xf32>
    %246 = arith.mulf %245, %244 : vector<4x256xf32>
    %247 = arith.addf %241, %246 : vector<4x256xf32>
    %c41 = arith.constant 41 : index
    %248 = memref.load %arg2[%c41] : memref<54xf32, #tpu.memory_space<smem>>
    %c0_165 = arith.constant 0 : index
    %c41_166 = arith.constant 41 : index
    %c0_167 = arith.constant 0 : index
    %c0_168 = arith.constant 0 : index
    %249 = vector.load %arg5[%c0_165, %c41_166, %c0_167, %c0_168] : memref<1x54x4x256xf32, #tpu.memory_space<vmem>>, vector<1x1x4x256xf32>
    %250 = vector.shape_cast %249 : vector<1x1x4x256xf32> to vector<4x256xf32>
    %251 = vector.broadcast %248 : f32 to vector<4x256xf32>
    %252 = arith.mulf %251, %250 : vector<4x256xf32>
    %253 = arith.addf %247, %252 : vector<4x256xf32>
    %c42 = arith.constant 42 : index
    %254 = memref.load %arg2[%c42] : memref<54xf32, #tpu.memory_space<smem>>
    %c0_169 = arith.constant 0 : index
    %c42_170 = arith.constant 42 : index
    %c0_171 = arith.constant 0 : index
    %c0_172 = arith.constant 0 : index
    %255 = vector.load %arg5[%c0_169, %c42_170, %c0_171, %c0_172] : memref<1x54x4x256xf32, #tpu.memory_space<vmem>>, vector<1x1x4x256xf32>
    %256 = vector.shape_cast %255 : vector<1x1x4x256xf32> to vector<4x256xf32>
    %257 = vector.broadcast %254 : f32 to vector<4x256xf32>
    %258 = arith.mulf %257, %256 : vector<4x256xf32>
    %259 = arith.addf %253, %258 : vector<4x256xf32>
    %c43 = arith.constant 43 : index
    %260 = memref.load %arg2[%c43] : memref<54xf32, #tpu.memory_space<smem>>
    %c0_173 = arith.constant 0 : index
    %c43_174 = arith.constant 43 : index
    %c0_175 = arith.constant 0 : index
    %c0_176 = arith.constant 0 : index
    %261 = vector.load %arg5[%c0_173, %c43_174, %c0_175, %c0_176] : memref<1x54x4x256xf32, #tpu.memory_space<vmem>>, vector<1x1x4x256xf32>
    %262 = vector.shape_cast %261 : vector<1x1x4x256xf32> to vector<4x256xf32>
    %263 = vector.broadcast %260 : f32 to vector<4x256xf32>
    %264 = arith.mulf %263, %262 : vector<4x256xf32>
    %265 = arith.addf %259, %264 : vector<4x256xf32>
    %c44 = arith.constant 44 : index
    %266 = memref.load %arg2[%c44] : memref<54xf32, #tpu.memory_space<smem>>
    %c0_177 = arith.constant 0 : index
    %c44_178 = arith.constant 44 : index
    %c0_179 = arith.constant 0 : index
    %c0_180 = arith.constant 0 : index
    %267 = vector.load %arg5[%c0_177, %c44_178, %c0_179, %c0_180] : memref<1x54x4x256xf32, #tpu.memory_space<vmem>>, vector<1x1x4x256xf32>
    %268 = vector.shape_cast %267 : vector<1x1x4x256xf32> to vector<4x256xf32>
    %269 = vector.broadcast %266 : f32 to vector<4x256xf32>
    %270 = arith.mulf %269, %268 : vector<4x256xf32>
    %271 = arith.addf %265, %270 : vector<4x256xf32>
    %c45 = arith.constant 45 : index
    %272 = memref.load %arg2[%c45] : memref<54xf32, #tpu.memory_space<smem>>
    %c0_181 = arith.constant 0 : index
    %c45_182 = arith.constant 45 : index
    %c0_183 = arith.constant 0 : index
    %c0_184 = arith.constant 0 : index
    %273 = vector.load %arg5[%c0_181, %c45_182, %c0_183, %c0_184] : memref<1x54x4x256xf32, #tpu.memory_space<vmem>>, vector<1x1x4x256xf32>
    %274 = vector.shape_cast %273 : vector<1x1x4x256xf32> to vector<4x256xf32>
    %275 = vector.broadcast %272 : f32 to vector<4x256xf32>
    %276 = arith.mulf %275, %274 : vector<4x256xf32>
    %277 = arith.addf %271, %276 : vector<4x256xf32>
    %c46 = arith.constant 46 : index
    %278 = memref.load %arg2[%c46] : memref<54xf32, #tpu.memory_space<smem>>
    %c0_185 = arith.constant 0 : index
    %c46_186 = arith.constant 46 : index
    %c0_187 = arith.constant 0 : index
    %c0_188 = arith.constant 0 : index
    %279 = vector.load %arg5[%c0_185, %c46_186, %c0_187, %c0_188] : memref<1x54x4x256xf32, #tpu.memory_space<vmem>>, vector<1x1x4x256xf32>
    %280 = vector.shape_cast %279 : vector<1x1x4x256xf32> to vector<4x256xf32>
    %281 = vector.broadcast %278 : f32 to vector<4x256xf32>
    %282 = arith.mulf %281, %280 : vector<4x256xf32>
    %283 = arith.addf %277, %282 : vector<4x256xf32>
    %c47 = arith.constant 47 : index
    %284 = memref.load %arg2[%c47] : memref<54xf32, #tpu.memory_space<smem>>
    %c0_189 = arith.constant 0 : index
    %c47_190 = arith.constant 47 : index
    %c0_191 = arith.constant 0 : index
    %c0_192 = arith.constant 0 : index
    %285 = vector.load %arg5[%c0_189, %c47_190, %c0_191, %c0_192] : memref<1x54x4x256xf32, #tpu.memory_space<vmem>>, vector<1x1x4x256xf32>
    %286 = vector.shape_cast %285 : vector<1x1x4x256xf32> to vector<4x256xf32>
    %287 = vector.broadcast %284 : f32 to vector<4x256xf32>
    %288 = arith.mulf %287, %286 : vector<4x256xf32>
    %289 = arith.addf %283, %288 : vector<4x256xf32>
    %c48 = arith.constant 48 : index
    %290 = memref.load %arg2[%c48] : memref<54xf32, #tpu.memory_space<smem>>
    %c0_193 = arith.constant 0 : index
    %c48_194 = arith.constant 48 : index
    %c0_195 = arith.constant 0 : index
    %c0_196 = arith.constant 0 : index
    %291 = vector.load %arg5[%c0_193, %c48_194, %c0_195, %c0_196] : memref<1x54x4x256xf32, #tpu.memory_space<vmem>>, vector<1x1x4x256xf32>
    %292 = vector.shape_cast %291 : vector<1x1x4x256xf32> to vector<4x256xf32>
    %293 = vector.broadcast %290 : f32 to vector<4x256xf32>
    %294 = arith.mulf %293, %292 : vector<4x256xf32>
    %295 = arith.addf %289, %294 : vector<4x256xf32>
    %c49 = arith.constant 49 : index
    %296 = memref.load %arg2[%c49] : memref<54xf32, #tpu.memory_space<smem>>
    %c0_197 = arith.constant 0 : index
    %c49_198 = arith.constant 49 : index
    %c0_199 = arith.constant 0 : index
    %c0_200 = arith.constant 0 : index
    %297 = vector.load %arg5[%c0_197, %c49_198, %c0_199, %c0_200] : memref<1x54x4x256xf32, #tpu.memory_space<vmem>>, vector<1x1x4x256xf32>
    %298 = vector.shape_cast %297 : vector<1x1x4x256xf32> to vector<4x256xf32>
    %299 = vector.broadcast %296 : f32 to vector<4x256xf32>
    %300 = arith.mulf %299, %298 : vector<4x256xf32>
    %301 = arith.addf %295, %300 : vector<4x256xf32>
    %c50 = arith.constant 50 : index
    %302 = memref.load %arg2[%c50] : memref<54xf32, #tpu.memory_space<smem>>
    %c0_201 = arith.constant 0 : index
    %c50_202 = arith.constant 50 : index
    %c0_203 = arith.constant 0 : index
    %c0_204 = arith.constant 0 : index
    %303 = vector.load %arg5[%c0_201, %c50_202, %c0_203, %c0_204] : memref<1x54x4x256xf32, #tpu.memory_space<vmem>>, vector<1x1x4x256xf32>
    %304 = vector.shape_cast %303 : vector<1x1x4x256xf32> to vector<4x256xf32>
    %305 = vector.broadcast %302 : f32 to vector<4x256xf32>
    %306 = arith.mulf %305, %304 : vector<4x256xf32>
    %307 = arith.addf %301, %306 : vector<4x256xf32>
    %c51 = arith.constant 51 : index
    %308 = memref.load %arg2[%c51] : memref<54xf32, #tpu.memory_space<smem>>
    %c0_205 = arith.constant 0 : index
    %c51_206 = arith.constant 51 : index
    %c0_207 = arith.constant 0 : index
    %c0_208 = arith.constant 0 : index
    %309 = vector.load %arg5[%c0_205, %c51_206, %c0_207, %c0_208] : memref<1x54x4x256xf32, #tpu.memory_space<vmem>>, vector<1x1x4x256xf32>
    %310 = vector.shape_cast %309 : vector<1x1x4x256xf32> to vector<4x256xf32>
    %311 = vector.broadcast %308 : f32 to vector<4x256xf32>
    %312 = arith.mulf %311, %310 : vector<4x256xf32>
    %313 = arith.addf %307, %312 : vector<4x256xf32>
    %c52 = arith.constant 52 : index
    %314 = memref.load %arg2[%c52] : memref<54xf32, #tpu.memory_space<smem>>
    %c0_209 = arith.constant 0 : index
    %c52_210 = arith.constant 52 : index
    %c0_211 = arith.constant 0 : index
    %c0_212 = arith.constant 0 : index
    %315 = vector.load %arg5[%c0_209, %c52_210, %c0_211, %c0_212] : memref<1x54x4x256xf32, #tpu.memory_space<vmem>>, vector<1x1x4x256xf32>
    %316 = vector.shape_cast %315 : vector<1x1x4x256xf32> to vector<4x256xf32>
    %317 = vector.broadcast %314 : f32 to vector<4x256xf32>
    %318 = arith.mulf %317, %316 : vector<4x256xf32>
    %319 = arith.addf %313, %318 : vector<4x256xf32>
    %c53 = arith.constant 53 : index
    %320 = memref.load %arg2[%c53] : memref<54xf32, #tpu.memory_space<smem>>
    %c0_213 = arith.constant 0 : index
    %c53_214 = arith.constant 53 : index
    %c0_215 = arith.constant 0 : index
    %c0_216 = arith.constant 0 : index
    %321 = vector.load %arg5[%c0_213, %c53_214, %c0_215, %c0_216] : memref<1x54x4x256xf32, #tpu.memory_space<vmem>>, vector<1x1x4x256xf32>
    %322 = vector.shape_cast %321 : vector<1x1x4x256xf32> to vector<4x256xf32>
    %323 = vector.broadcast %320 : f32 to vector<4x256xf32>
    %324 = arith.mulf %323, %322 : vector<4x256xf32>
    %325 = arith.addf %319, %324 : vector<4x256xf32>
    %c0_217 = arith.constant 0 : index
    %c0_218 = arith.constant 0 : index
    %c0_219 = arith.constant 0 : index
    %326 = vector.load %arg6[%c0_217, %c0_218, %c0_219] : memref<1x8x256xf32, #tpu.memory_space<vmem>>, vector<1x8x256xf32>
    %327 = vector.shape_cast %326 : vector<1x8x256xf32> to vector<8x256xf32>
    %328 = tpu.concatenate %327, %325 in 0 : vector<8x256xf32>, vector<4x256xf32> -> vector<12x256xf32>
    %c0_220 = arith.constant 0 : index
    %c0_221 = arith.constant 0 : index
    %329 = vector.load %arg7[%c0_220, %c0_221] : memref<16x12xf32, #tpu.memory_space<vmem>>, vector<16x12xf32>
    %cst = arith.constant dense<0.000000e+00> : vector<16x256xf32>
    %330 = tpu.matmul %329, %328, %cst {dimension_numbers = #tpu.dot_dimension_numbers<[1], [0], [0], [1], [0, 0, 1, 1], [], []>} : vector<16x12xf32>, vector<12x256xf32>, vector<16x256xf32> -> vector<16x256xf32>
    %c0_222 = arith.constant 0 : index
    %c0_223 = arith.constant 0 : index
    %331 = vector.load %arg8[%c0_222, %c0_223] : memref<16x1xf32, #tpu.memory_space<vmem>>, vector<16x1xf32>
    %332 = vector.broadcast %331 : vector<16x1xf32> to vector<16x256xf32>
    %333 = arith.addf %330, %332 : vector<16x256xf32>
    %cst_224 = arith.constant 0.000000e+00 : f32
    %334 = vector.broadcast %cst_224 : f32 to vector<16x256xf32>
    %335 = arith.maximumf %333, %334 : vector<16x256xf32>
    %c0_225 = arith.constant 0 : index
    %c0_226 = arith.constant 0 : index
    %336 = vector.load %arg9[%c0_225, %c0_226] : memref<1x16xf32, #tpu.memory_space<vmem>>, vector<1x16xf32>
    %cst_227 = arith.constant dense<0.000000e+00> : vector<1x256xf32>
    %337 = tpu.matmul %336, %335, %cst_227 {dimension_numbers = #tpu.dot_dimension_numbers<[1], [0], [0], [1], [0, 0, 1, 1], [], []>} : vector<1x16xf32>, vector<16x256xf32>, vector<1x256xf32> -> vector<1x256xf32>
    %c0_228 = arith.constant 0 : index
    %338 = memref.load %arg4[%c0_228] : memref<1xf32, #tpu.memory_space<smem>>
    %339 = vector.broadcast %338 : f32 to vector<1x256xf32>
    %340 = arith.addf %337, %339 : vector<1x256xf32>
    %341 = arith.negf %340 : vector<1x256xf32>
    %342 = math.exp %341 : vector<1x256xf32>
    %cst_229 = arith.constant 1.000000e+00 : f32
    %343 = vector.broadcast %cst_229 : f32 to vector<1x256xf32>
    %344 = arith.addf %343, %342 : vector<1x256xf32>
    %345 = arith.divf %343, %344 : vector<1x256xf32>
    %346 = vector.broadcast %345 : vector<1x256xf32> to vector<4x256xf32>
    %347 = arith.mulf %325, %346 : vector<4x256xf32>
    %c0_230 = arith.constant 0 : index
    %c0_231 = arith.constant 0 : index
    %c0_232 = arith.constant 0 : index
    %348 = vector.load %arg10[%c0_230, %c0_231, %c0_232] : memref<1x4x256xf32, #tpu.memory_space<vmem>>, vector<1x4x256xf32>
    %349 = vector.shape_cast %348 : vector<1x4x256xf32> to vector<4x256xf32>
    %350 = vector.shape_cast %347 : vector<4x256xf32> to vector<1x4x256xf32>
    tpu.vector_store %arg10[%c0_230, %c0_231, %c0_232], %350 {strides = array<i32>} : memref<1x4x256xf32, #tpu.memory_space<vmem>>, vector<1x4x256xf32>,
    return
  }
  func.func @transform_0(%arg0: i32, %arg1: i32) -> i32 {
    %c0_i32 = arith.constant 0 : i32
    %c0_i32_0 = arith.constant 0 : i32
    return %c0_i32 : i32
  }
  func.func @transform_1(%arg0: i32, %arg1: i32) -> i32 {
    %c0_i32 = arith.constant 0 : i32
    %c0_i32_0 = arith.constant 0 : i32
    return %c0_i32 : i32
  }
  func.func @transform_2(%arg0: i32, %arg1: i32) -> i32 {
    %c0_i32 = arith.constant 0 : i32
    %c0_i32_0 = arith.constant 0 : i32
    return %c0_i32 : i32
  }
  func.func @transform_3(%arg0: i32, %arg1: i32) -> (i32, i32, i32, i32) {
    %c0_i32 = arith.constant 0 : i32
    %c0_i32_0 = arith.constant 0 : i32
    %c0_i32_1 = arith.constant 0 : i32
    return %arg0, %c0_i32, %c0_i32_0, %arg1 : i32, i32, i32, i32
  }
  func.func @transform_4(%arg0: i32, %arg1: i32) -> (i32, i32, i32) {
    %c0_i32 = arith.constant 0 : i32
    %c0_i32_0 = arith.constant 0 : i32
    return %arg0, %c0_i32, %arg1 : i32, i32, i32
  }
  func.func @transform_5(%arg0: i32, %arg1: i32) -> (i32, i32) {
    %c0_i32 = arith.constant 0 : i32
    %c0_i32_0 = arith.constant 0 : i32
    %c0_i32_1 = arith.constant 0 : i32
    return %c0_i32, %c0_i32_0 : i32, i32
  }
  func.func @transform_6(%arg0: i32, %arg1: i32) -> (i32, i32) {
    %c0_i32 = arith.constant 0 : i32
    %c0_i32_0 = arith.constant 0 : i32
    %c0_i32_1 = arith.constant 0 : i32
    return %c0_i32, %c0_i32_0 : i32, i32
  }
  func.func @transform_7(%arg0: i32, %arg1: i32) -> (i32, i32) {
    %c0_i32 = arith.constant 0 : i32
    %c0_i32_0 = arith.constant 0 : i32
    %c0_i32_1 = arith.constant 0 : i32
    return %c0_i32, %c0_i32_0 : i32, i32
  }
  func.func @transform_8(%arg0: i32, %arg1: i32) -> (i32, i32, i32) {
    %c0_i32 = arith.constant 0 : i32
    %c0_i32_0 = arith.constant 0 : i32
    return %arg0, %c0_i32, %arg1 : i32, i32, i32
  }
}

</mosaic_0001>

<bundles_post_ra>
// kernel: tpu_custom_call.1
= control target key start
LH: loop header
LB: loop body
LE: loop exit
PB: predicated region body
PF: predicated region fallthrough
CT: control target
= control target key end

     0   :  { %s1816_s0 = inlined_call_operand.vmem [shape: f32[54], index: 0, kind: input, shape index: {}]   ;;  %s1817_s1 = inlined_call_operand.<no memory space> [shape: f32[1], index: 1, kind: input, shape index: {}]   ;;  %s1818_s2 = inlined_call_operand.<no memory space> [shape: f32[1], index: 2, kind: input, shape index: {}]   ;;  %s1819_s3 = inlined_call_operand.hbm [shape: f32[2,54,4,256], index: 3, kind: input, shape index: {}]   ;;  %s1820_s4 = inlined_call_operand.hbm [shape: f32[2,8,256], index: 4, kind: input, shape index: {}]   ;;  %s1821_s5 = inlined_call_operand.vmem [shape: f32[16,12], index: 5, kind: input, shape index: {}]   ;;  %s1822_s6 = inlined_call_operand.vmem [shape: f32[16,1], index: 6, kind: input, shape index: {}]   ;;  %s1823_s7 = inlined_call_operand.vmem [shape: f32[1,16], index: 7, kind: input, shape index: {}]   ;;  %s1824_s8 = inlined_call_operand.hbm [shape: f32[2,4,256], index: 8, kind: output, shape index: {}]  }
   0x1   :  { %1831 = sst [smem:[#allocation21_spill]] %s1816_s0 }
   0x2   :  { %1832 = sst [smem:[#allocation22_spill]] %s1819_s3 }
   0x3   :  { %13 = sst [smem:[#allocation2]] %s1817_s1 }
   0x4   :  { %14 = sst [smem:[#allocation3]] %s1818_s2 }
   0x5   :  { %15 = vsyncpa [#allocation7], 0 }
   0x6   :  { %16 = vsyncpa [#allocation5], 0 }
   0x7   :  { %18 = vsyncpa [#allocation5 + $0x1], 0 }
   0x8   :  { %19 = vsyncpa [#allocation10], 0 }
   0x9   :  { %21 = vsyncpa [#allocation10 + $0x1], 0 }
   0xa   :  { %22 = vsyncpa [#allocation6], 0 }
   0xb   :  { %24 = vsyncpa [#allocation6 + $0x1], 0  ;;  %s1529_s9 = smov 0   ;;  %s1531_s10 = smov 0  }
   0xc   :  { %s1533_s11 = smov 0   ;;  %s1535_s12 = smov 0  }
   0xd   :  { %s1537_s1 = smov 0   ;;  %s1539_s13 = smov 0  }
   0xe LB: > { %1833 = sst [smem:[#allocation16_spill]] %s1448_s9  ;;  %s1082_s2 = sadd.s32 4294967295, %s1468_s13   ;;  %s1468_s13 = sphi %s1539_s13, %s30_s13   ;;  %s1464_s1 = sphi %s1537_s1, %s1862_s1   ;;  %s1460_s12 = sphi %s1535_s12, %s1861_s12   ;;  %s1456_s11 = sphi %s1533_s11, %s1860_s11   ;;  %s1452_s10 = sphi %s1531_s10, %s1859_s10   ;;  %s1448_s9 = sphi %s1529_s9, %s1858_s9  }
   0xf   : > { %1834 = sst [smem:[#allocation17_spill]] %s1468_s13  ;;  %s1083_s14 = sadd.s32 4294967294, %s1468_s13  }
  0x10   : > { %p121_p0 = scmp.ne.s32.totalorder %s1456_s11, %s1452_s10  ;;  %p122_p1 = scmp.eq.s32.totalorder %s1468_s13, 0 }
  0x11   : > { %p127_p2 = scmp.ne.s32.totalorder %s1452_s10, %s1448_s9  ;;  %p1567_p3 = scmp.eq.s32.totalorder %s1082_s2, 0 }
  0x12   : > { %p244_p4 = scmp.eq.s32.totalorder %s1082_s2, 1  ;;  %p1571_p5 = por %p122_p1, %p121_p0 }
  0x13   : > { %p250_p6 = scmp.eq.s32.totalorder %s1083_s14, 1  ;;  %p1577_p7 = por %p1567_p3, %p127_p2 }
  0x14   : > { %p1581_p8 = por %p244_p4, %p121_p0  ;;  %p1084_p10 = scmp.ge.s32.totalorder %s1468_s13, 1 }
  0x15   : > { %p1585_p9 = por %p250_p6, %p127_p2  ;;  %p257_p11 = scmp.lt.s32.totalorder %s1468_s13, 3 }
  0x16   : > { %s1838_s19 = scalar_select %p1581_p8, 1, 0 }
  0x17   : > { %s1839_s20 = scalar_select %p1585_p9, 1, 0 }
  0x18   : > { %s1841_s0 = sld [smem:[#allocation21_spill]]  ;;  %p1594_p12 = pnand %p1084_p10, %p257_p11 }
  0x19   : > { %1840 = sst [smem:[#allocation18_spill]] %s1839_s20  ;;  %p1244_p0 = scmp.lt.s32.totalorder %s1468_s13, 2 }
  0x1a   : > { %p1228_p1 = pneg %p1594_p12  ;;  %s42_s27 = sadd.s32 1, %s1464_s1 }
  0x1b   : > { %p1604_p2 = pnand %p1244_p0, %p1571_p5  ;;  %p1615_p6 = scmp.ge.s32.totalorder %s42_s27, 2 }
  0x1c   : > { %p1610_p4 = pnand %p1228_p1, %p1567_p3  ;;  %s1620_s29 = sand.u32 1, %s1456_s11  }
  0x1e   : > { %s270_s23 = sshll.u32 %s1841_s0, 4  ;;  %p1311_p5 = pneg %p1610_p4  ;;  %s271_s23 = int_to_ptr.vmem [resolvable:$true] %s270_s23 }
  0x1f   : > { %s1309_s30 = scalar_lea.vmem %s271_s23, 16  ;;  %p1317_p13 = scmp.lt.s32.totalorder %s271_s23, %s271_s23 }
  0x20   : > { %p1310_p10 = scmp.ne.s32.totalorder %s271_s23, %s1309_s30  ;;  %p1318_p9 = scmp.lt.s32.totalorder %s1309_s30, %s1309_s30 }
  0x22   : > { %p1312_p11 = pnand %p1311_p5, %p1310_p10  ;;  %p1319_p1 = por %p1318_p9, %p1317_p13 }
  0x24   : > { %p1313_p0 = pneg %p1312_p11 }
  0x26   : > { %p1320_p8 = pnand %p1319_p1, %p1313_p0 }
  0x28   : > { %1323 = shalt.err (!%p1320_p8)
}
  0x29   : > { %s1470_s2 = smov [#allocation4]   ;;  %s1864_s27 = smov (%p1615_p6, %s42_s27), 0 }
  0x2a   : > { %1231 = dma.vmem_to_smem (!%p1610_p4), %s271_s23, 16, %s1470_s2, [#allocation7]  }
  0x2b   : > { %1846 = sst [smem:[#allocation19_spill]] %s1864_s27  ;;  %s1215_s14 = smul.u32 432, %s1620_s29 }
  0x2c   : > { %s109_s17 = ssub.s32 %s1464_s1, %s1864_s27  ;;  %s1216_s21 = smul.u32 6912, %s1464_s1 }
  0x2d   : > { %p112_p8 = scmp.eq.s32.totalorder %s109_s17, 0  ;;  %s1847_s3 = sld [smem:[#allocation22_spill]] }
  0x2e   : > { %s300_s15 = scalar_lea.vmem [#allocation8], %s1215_s14  ;;  %s1848_s13 = sadd.s32 1, %s1456_s11 }
  0x2f   : > { %s309_s0 = sshll.u32 %s300_s15, 4  ;;  %s297_s9 = scalar_lea.sflag [#allocation5], %s1620_s29  ;;  %s310_s0 = int_to_ptr.vmem [resolvable:$true] %s309_s0 }
  0x30   : > { %s1640_s20 = scalar_select %p112_p8, %s1456_s11, %s1848_s13  }
  0x31   : > { %p1326_p9 = pneg %p1604_p2  ;;  %s1337_s23 = scalar_lea.vmem %s310_s0, 6912 }
  0x32   : > { %1849 = sst [smem:[#allocation20_spill]] %s1640_s20  ;;  %p1338_p13 = scmp.ne.s32.totalorder %s310_s0, %s1337_s23 }
  0x33   : > { %s308_s30 = scalar_lea.hbm %s1847_s3, %s1216_s21  ;;  %s1471_s28 = smov [#allocation8]  }
  0x34   : > { %p1340_p4 = pnand %p1338_p13, %p1326_p9  ;;  %s1342_s2 = sshll.u32 %s1471_s28, 4  ;;  %s1343_s2 = int_to_ptr.vmem [resolvable:$false] %s1342_s2 }
  0x35   : > { %s1344_s17 = scalar_lea.vmem %s1343_s2, 13824  ;;  %p1345_p10 = scmp.lt.s32.totalorder %s310_s0, %s1343_s2 }
  0x36   : > { %p1341_p6 = pneg %p1340_p4  ;;  %p1346_p5 = scmp.lt.s32.totalorder %s1344_s17, %s1337_s23 }
  0x38   : > { %p1347_p11 = por %p1346_p5, %p1345_p10 }
  0x3a   : > { %p1348_p0 = pnand %p1347_p11, %p1341_p6 }
  0x3c   : > { %1351 = shalt.err (!%p1348_p0)
}
  0x3d   : > { %s1472_s13 = smov 128   ;;  %s1473_s15 = smov 8  }
  0x3e   : > { %1235 = dma.hbm_to_vmem [thread:$0]  (!%p1604_p2), %s308_s30, 6912, %s310_s0, %s297_s9, %s1472_s13, %s1472_s13, %s1473_s15  }
  0x3f   : > { %s1088_s14 = sshll.u32 %s1620_s29, 4  ;;  %s1213_s21 = sshll.u32 %s1464_s1, 8 }
  0x40   : > { %s331_s28 = scalar_lea.hbm %s1820_s4, %s1213_s21  ;;  %s323_s2 = scalar_lea.vmem [#allocation9], %s1088_s14 }
  0x41   : > { %s333_s23 = sshll.u32 %s323_s2, 4  ;;  %s320_s17 = scalar_lea.sflag [#allocation10], %s1620_s29  ;;  %s334_s23 = int_to_ptr.vmem [resolvable:$true] %s333_s23 }
  0x42   : > { %s1365_s3 = scalar_lea.vmem %s334_s23, 256  ;;  %s1474_s27 = smov [#allocation9]  }
  0x43   : > { %p1366_p1 = scmp.ne.s32.totalorder %s334_s23, %s1365_s3  ;;  %s1370_s20 = sshll.u32 %s1474_s27, 4  ;;  %s1371_s20 = int_to_ptr.vmem [resolvable:$false] %s1370_s20 }
  0x44   : > { %s1372_s0 = scalar_lea.vmem %s1371_s20, 512  ;;  %p1373_p4 = scmp.lt.s32.totalorder %s334_s23, %s1371_s20 }
  0x45   : > { %p1368_p8 = pnand %p1366_p1, %p1326_p9  ;;  %p1374_p6 = scmp.lt.s32.totalorder %s1372_s0, %s1365_s3 }
  0x47   : > { %p1369_p13 = pneg %p1368_p8  ;;  %p1375_p10 = por %p1374_p6, %p1373_p4 }
  0x49   : > { %p1376_p5 = pnand %p1375_p10, %p1369_p13 }
  0x4b   : > { %1379 = shalt.err (!%p1376_p5)
}
  0x4c   : > { %1238 = dma.hbm_to_vmem [thread:$0]  (!%p1604_p2), %s331_s28, 256, %s334_s23, %s320_s17  }
  0x4d   : > { %342 = sbr.rel (%p1594_p12) target bundleno = 672 (0x2a0), region = 52 }
  0x52   : > { %1431 = dma.done.wait (%p1567_p3), [#allocation7], 16  }
  0x53   : > { %1433 = vsyncadd (%p1567_p3), [#allocation7], 4294967280  ;;  %s1668_s9 = sand.u32 1, %s1452_s10  }
  0x54   : > { %s1217_s3 = smul.u32 432, %s1668_s9  ;;  %s349_s20 = scalar_lea.sflag [#allocation5], %s1668_s9 }
  0x56   : > { %s1672_s27 = scalar_lea.vmem [#allocation8], %s1217_s3 }
  0x57   : > { %1435 = dma.done.wait (%p1577_p7), %s349_s20, 6912  }
  0x58   : > { %1437 = vsyncadd (%p1577_p7), %s349_s20, 4294960384  ;;  %s1093_s16 = sshll.u32 %s1668_s9, 4  ;;  %s358_s24 = scalar_lea.sflag [#allocation10], %s1668_s9 }
  0x59   : > { %s1680_s25 = scalar_lea.vmem [#allocation9], %s1093_s16 }
  0x5a   : > { %1439 = dma.done.wait (%p1577_p7), %s358_s24, 256  }
  0x5b   : > { %1441 = vsyncadd (%p1577_p7), %s358_s24, 4294967040 }
  0x5c   : > { %366 = sfence }
  0x5d   : > { %s403_s29 = sld [smem:[#allocation2]]  ;;  %v1475_v0 = vmov 0.0   ;;  %v1476_v1 = vmov 0   ;;  %v406_v2 = vld [vmem:[%s1672_s27] sm:$0xff]  ;;  %v1096_v3 = vld [vmem:[%s1672_s27 + $0x8] sm:$0xff]  ;;  %v1098_v6 = vld [vmem:[%s1672_s27 + $0x10] sm:$0xff] }
  0x5e   : > { %s405_s30 = sld [smem:[#allocation4]]  ;;  %822 = vmatprep.mubr.f32.mxu0 %v1475_v0  ;;  %910 = vmatprep.mubr.f32.mxu1 %v1475_v0  ;;  %v1100_v11 = vld [vmem:[%s1672_s27 + $0x18] sm:$0xff]  ;;  %v1102_v15 = vld [vmem:[%s1672_s27 + $0x20] sm:$0xff]  ;;  %v1104_v19 = vld [vmem:[%s1672_s27 + $0x28] sm:$0xff]  ;;  %vm753_vm0 = vcmask 1043456   ;;  %vm746_vm1 = vcmask 97280  }
  0x5f   : > { %s1095_s13 = sld [smem:[#allocation4 + $0x1]]  ;;  %1300 = vset.pattern.permute.xlu0 %v1476_v1  ;;  %v1106_v23 = vld [vmem:[%s1672_s27 + $0x30] sm:$0xff]  ;;  %v1108_v27 = vld [vmem:[%s1672_s27 + $0x38] sm:$0xff]  ;;  %v1110_v31 = vld [vmem:[%s1672_s27 + $0x40] sm:$0xff]  ;;  %vm842_vm2 = vcmask 130048   ;;  %p1850_p7 = scmp.ne.s32.totalorder %s1838_s19, 0 }
  0x60   : > { %s1097_s15 = sld [smem:[#allocation4 + $0x2]]  ;;  %v735_v33 = vld [vmem:[%s1822_s6 + $0x8] sm:$0xff]  ;;  %v734_v38 = vld [vmem:[%s1822_s6] sm:$0xff] }
  0x61   : > { %s1099_s14 = sld [smem:[#allocation4 + $0x3]]  ;;  %743 = vperm.xlu0 %1300, %v735_v33   ;;  %v1112_v36 = vld [vmem:[%s1672_s27 + $0x48] sm:$0xff]  ;;  %v1114_v41 = vld [vmem:[%s1672_s27 + $0x50] sm:$0xff]  ;;  %v1116_v45 = vld [vmem:[%s1672_s27 + $0x58] sm:$0xff] }
  0x62   : > { %s1101_s18 = sld [smem:[#allocation4 + $0x4]]  ;;  %v1118_v49 = vld [vmem:[%s1672_s27 + $0x60] sm:$0xff]  ;;  %v1120_v53 = vld [vmem:[%s1672_s27 + $0x68] sm:$0xff]  ;;  %v1122_v57 = vld [vmem:[%s1672_s27 + $0x70] sm:$0xff] }
  0x63   : > { %s1103_s21 = sld [smem:[#allocation4 + $0x5]]  ;;  %v404_v4 = vstv %s403_s29  ;;  %v1124_v61 = vld [vmem:[%s1672_s27 + $0x78] sm:$0xff] }
  0x64   : > { %v407_v5 = vstv %s405_s30  ;;  %s1105_s22 = sld [smem:[#allocation4 + $0x6]] }
  0x65   : > { %v408_v7 = vmul.f32 %v407_v5, %v406_v2  ;;  %v413_v8 = vstv %s1095_s13  ;;  %s1107_s26 = sld [smem:[#allocation4 + $0x7]]  ;;  %738 = vperm.xlu0 %1300, %v734_v38   ;;  %v1126_v2 = vld [vmem:[%s1672_s27 + $0x80] sm:$0xff]  ;;  %v1144_v38 = vld [vmem:[%s1672_s27 + $0xc8] sm:$0xff] }
  0x66   : > { %v414_v9 = vmul.f32 %v1096_v3, %v413_v8  ;;  %v419_v10 = vstv %s1097_s15  ;;  %s1109_s28 = sld [smem:[#allocation4 + $0x8]] }
  0x67   : > { %v409_v12 = vadd.f32 %v408_v7, %v404_v4  ;;  %v420_v13 = vmul.f32 %v1098_v6, %v419_v10  ;;  %v425_v14 = vstv %s1099_s14  ;;  %s1111_s2 = sld [smem:[#allocation4 + $0x9]]  ;;  %v1128_v6 = vld [vmem:[%s1672_s27 + $0x88] sm:$0xff]  ;;  %v1130_v10 = vld [vmem:[%s1672_s27 + $0x90] sm:$0xff] }
  0x68   : > { %v431_v16 = vstv %s1101_s18  ;;  %v426_v18 = vmul.f32 %v1100_v11, %v425_v14  ;;  %s1695_s23 = sld [smem:[#allocation4 + $0xa]]  ;;  %v1132_v14 = vld [vmem:[%s1672_s27 + $0x98] sm:$0xff] }
  0x69   : > { %v415_v17 = vadd.f32 %v414_v9, %v409_v12  ;;  %v437_v20 = vstv %s1103_s21  ;;  %v432_v22 = vmul.f32 %v1102_v15, %v431_v16  ;;  %s1698_s17 = sld [smem:[#allocation4 + $0xb]] }
  0x6a   : > { %v443_v24 = vstv %s1105_s22  ;;  %v438_v26 = vmul.f32 %v1104_v19, %v437_v20  ;;  %s1701_s0 = sld [smem:[#allocation4 + $0xc]] }
  0x6b   : > { %v421_v21 = vadd.f32 %v420_v13, %v415_v17  ;;  %v449_v28 = vstv %s1107_s26  ;;  %v444_v30 = vmul.f32 %v1106_v23, %v443_v24  ;;  %s1119_s16 = sld [smem:[#allocation4 + $0xd]] }
  0x6c   : > { %v455_v32 = vstv %s1109_s28  ;;  %v450_v35 = vmul.f32 %v1108_v27, %v449_v28  ;;  %s1121_s30 = sld [smem:[#allocation4 + $0xe]] }
  0x6d   : > { %v427_v25 = vadd.f32 %v426_v18, %v421_v21  ;;  %v461_v37 = vstv %s1111_s2  ;;  %v456_v40 = vmul.f32 %v1110_v31, %v455_v32  ;;  %s1123_s13 = sld [smem:[#allocation4 + $0xf]]  ;;  %v1134_v18 = vld [vmem:[%s1672_s27 + $0xa0] sm:$0xff] }
  0x6e   : > { %v467_v42 = vstv %s1695_s23  ;;  %v462_v44 = vmul.f32 %v1112_v36, %v461_v37  ;;  %s1125_s15 = sld [smem:[#allocation4 + $0x10]] }
  0x6f   : > { %v433_v29 = vadd.f32 %v432_v22, %v427_v25  ;;  %v473_v46 = vstv %s1698_s17  ;;  %v468_v48 = vmul.f32 %v1114_v41, %v467_v42  ;;  %s1127_s14 = sld [smem:[#allocation4 + $0x11]]  ;;  %v1136_v22 = vld [vmem:[%s1672_s27 + $0xa8] sm:$0xff]  ;;  %v1146_v42 = vld [vmem:[%s1672_s27 + $0xd0] sm:$0xff] }
  0x70   : > { %v479_v50 = vstv %s1701_s0  ;;  %v474_v52 = vmul.f32 %v1116_v45, %v473_v46  ;;  %s1129_s18 = sld [smem:[#allocation4 + $0x12]]  ;;  %v1148_v46 = vld [vmem:[%s1672_s27 + $0xd8] sm:$0xff] }
  0x71   : > { %v439_v34 = vadd.f32 %v438_v26, %v433_v29  ;;  %v485_v54 = vstv %s1119_s16  ;;  %v480_v56 = vmul.f32 %v1118_v49, %v479_v50  ;;  %s1131_s21 = sld [smem:[#allocation4 + $0x13]]  ;;  %v1138_v26 = vld [vmem:[%s1672_s27 + $0xb0] sm:$0xff]  ;;  %v1150_v50 = vld [vmem:[%s1672_s27 + $0xe0] sm:$0xff] }
  0x72   : > { %v491_v58 = vstv %s1121_s30  ;;  %v486_v60 = vmul.f32 %v1120_v53, %v485_v54  ;;  %s1133_s22 = sld [smem:[#allocation4 + $0x14]]  ;;  %v1152_v54 = vld [vmem:[%s1672_s27 + $0xe8] sm:$0xff] }
  0x73   : > { %v445_v39 = vadd.f32 %v444_v30, %v439_v34  ;;  %v497_v62 = vstv %s1123_s13  ;;  %v492_v1 = vmul.f32 %v1122_v57, %v491_v58  ;;  %s1135_s26 = sld [smem:[#allocation4 + $0x15]]  ;;  %v1140_v30 = vld [vmem:[%s1672_s27 + $0xb8] sm:$0xff]  ;;  %v1142_v34 = vld [vmem:[%s1672_s27 + $0xc0] sm:$0xff]  ;;  %v1154_v58 = vld [vmem:[%s1672_s27 + $0xf0] sm:$0xff] }
  0x74   : > { %v503_v3 = vstv %s1125_s15  ;;  %v498_v5 = vmul.f32 %v1124_v61, %v497_v62  ;;  %s1137_s28 = sld [smem:[#allocation4 + $0x16]]  ;;  %v1156_v62 = vld [vmem:[%s1672_s27 + $0xf8] sm:$0xff] }
  0x75   : > { %v451_v43 = vadd.f32 %v450_v35, %v445_v39  ;;  %v509_v7 = vstv %s1127_s14  ;;  %v504_v9 = vmul.f32 %v1126_v2, %v503_v3  ;;  %s1139_s2 = sld [smem:[#allocation4 + $0x17]]  ;;  %v1158_v3 = vld [vmem:[%s1672_s27 + $0x100] sm:$0xff] }
  0x76   : > { %v515_v11 = vstv %s1129_s18  ;;  %v510_v13 = vmul.f32 %v1128_v6, %v509_v7  ;;  %s1141_s23 = sld [smem:[#allocation4 + $0x18]]  ;;  %v1160_v7 = vld [vmem:[%s1672_s27 + $0x108] sm:$0xff] }
  0x77   : > { %v457_v47 = vadd.f32 %v456_v40, %v451_v43  ;;  %v521_v15 = vstv %s1131_s21  ;;  %v516_v17 = vmul.f32 %v1130_v10, %v515_v11  ;;  %s1143_s17 = sld [smem:[#allocation4 + $0x19]]  ;;  %v1162_v11 = vld [vmem:[%s1672_s27 + $0x110] sm:$0xff] }
  0x78   : > { %v527_v19 = vstv %s1133_s22  ;;  %v522_v21 = vmul.f32 %v1132_v14, %v521_v15  ;;  %s1145_s0 = sld [smem:[#allocation4 + $0x1a]]  ;;  %v1164_v15 = vld [vmem:[%s1672_s27 + $0x118] sm:$0xff] }
  0x79   : > { %v463_v51 = vadd.f32 %v462_v44, %v457_v47  ;;  %v533_v23 = vstv %s1135_s26  ;;  %v528_v25 = vmul.f32 %v1134_v18, %v527_v19  ;;  %s1147_s3 = sld [smem:[#allocation4 + $0x1b]]  ;;  %v1166_v19 = vld [vmem:[%s1672_s27 + $0x120] sm:$0xff] }
  0x7a   : > { %v539_v27 = vstv %s1137_s28  ;;  %v534_v29 = vmul.f32 %v1136_v22, %v533_v23  ;;  %s1149_s20 = sld [smem:[#allocation4 + $0x1c]]  ;;  %v1168_v23 = vld [vmem:[%s1672_s27 + $0x128] sm:$0xff] }
  0x7b   : > { %v469_v55 = vadd.f32 %v468_v48, %v463_v51  ;;  %v545_v31 = vstv %s1139_s2  ;;  %v540_v33 = vmul.f32 %v1138_v26, %v539_v27  ;;  %s1151_s16 = sld [smem:[#allocation4 + $0x1d]]  ;;  %v1170_v27 = vld [vmem:[%s1672_s27 + $0x130] sm:$0xff] }
  0x7c   : > { %v551_v35 = vstv %s1141_s23  ;;  %v546_v37 = vmul.f32 %v1140_v30, %v545_v31  ;;  %s1153_s24 = sld [smem:[#allocation4 + $0x1e]]  ;;  %v1172_v31 = vld [vmem:[%s1672_s27 + $0x138] sm:$0xff] }
  0x7d   : > { %v475_v59 = vadd.f32 %v474_v52, %v469_v55  ;;  %v557_v39 = vstv %s1143_s17  ;;  %v552_v41 = vmul.f32 %v1142_v34, %v551_v35  ;;  %s1155_s29 = sld [smem:[#allocation4 + $0x1f]]  ;;  %v1174_v35 = vld [vmem:[%s1672_s27 + $0x140] sm:$0xff] }
  0x7e   : > { %v563_v43 = vstv %s1145_s0  ;;  %v558_v45 = vmul.f32 %v1144_v38, %v557_v39  ;;  %s1157_s30 = sld [smem:[#allocation4 + $0x20]]  ;;  %v1176_v39 = vld [vmem:[%s1672_s27 + $0x148] sm:$0xff] }
  0x7f   : > { %v481_v63 = vadd.f32 %v480_v56, %v475_v59  ;;  %v569_v47 = vstv %s1147_s3  ;;  %v564_v49 = vmul.f32 %v1146_v42, %v563_v43  ;;  %s1159_s13 = sld [smem:[#allocation4 + $0x21]]  ;;  %v1178_v43 = vld [vmem:[%s1672_s27 + $0x150] sm:$0xff] }
  0x80   : > { %v575_v51 = vstv %s1149_s20  ;;  %v570_v53 = vmul.f32 %v1148_v46, %v569_v47  ;;  %s1161_s15 = sld [smem:[#allocation4 + $0x22]]  ;;  %v1180_v47 = vld [vmem:[%s1672_s27 + $0x158] sm:$0xff] }
  0x81   : > { %v487_v4 = vadd.f32 %v486_v60, %v481_v63  ;;  %v581_v55 = vstv %s1151_s16  ;;  %v576_v57 = vmul.f32 %v1150_v50, %v575_v51  ;;  %s1163_s14 = sld [smem:[#allocation4 + $0x23]]  ;;  %v1182_v51 = vld [vmem:[%s1672_s27 + $0x160] sm:$0xff] }
  0x82   : > { %v587_v59 = vstv %s1153_s24  ;;  %v582_v61 = vmul.f32 %v1152_v54, %v581_v55  ;;  %s1165_s18 = sld [smem:[#allocation4 + $0x24]]  ;;  %v1184_v55 = vld [vmem:[%s1672_s27 + $0x168] sm:$0xff] }
  0x83   : > { %v493_v8 = vadd.f32 %v492_v1, %v487_v4  ;;  %v593_v63 = vstv %s1155_s29  ;;  %v588_v2 = vmul.f32 %v1154_v58, %v587_v59  ;;  %s1167_s21 = sld [smem:[#allocation4 + $0x25]]  ;;  %v1186_v59 = vld [vmem:[%s1672_s27 + $0x170] sm:$0xff] }
  0x84   : > { %v599_v4 = vstv %s1157_s30  ;;  %v594_v6 = vmul.f32 %v1156_v62, %v593_v63  ;;  %s1169_s22 = sld [smem:[#allocation4 + $0x26]]  ;;  %v1188_v63 = vld [vmem:[%s1672_s27 + $0x178] sm:$0xff] }
  0x85   : > { %v499_v12 = vadd.f32 %v498_v5, %v493_v8  ;;  %v605_v8 = vstv %s1159_s13  ;;  %v600_v10 = vmul.f32 %v1158_v3, %v599_v4  ;;  %s1171_s26 = sld [smem:[#allocation4 + $0x27]]  ;;  %v1190_v4 = vld [vmem:[%s1672_s27 + $0x180] sm:$0xff] }
  0x86   : > { %v606_v14 = vmul.f32 %v1160_v7, %v605_v8  ;;  %s1173_s28 = sld [smem:[#allocation4 + $0x28]]  ;;  %v1192_v8 = vld [vmem:[%s1672_s27 + $0x188] sm:$0xff] }
  0x87   : > { %v505_v16 = vadd.f32 %v504_v9, %v499_v12  ;;  %v611_v12 = vstv %s1161_s15  ;;  %s1175_s2 = sld [smem:[#allocation4 + $0x29]] }
  0x88   : > { %v612_v18 = vmul.f32 %v1162_v11, %v611_v12  ;;  %s1177_s23 = sld [smem:[#allocation4 + $0x2a]]  ;;  %v1194_v12 = vld [vmem:[%s1672_s27 + $0x190] sm:$0xff] }
  0x89   : > { %v511_v20 = vadd.f32 %v510_v13, %v505_v16  ;;  %v617_v16 = vstv %s1163_s14  ;;  %s1179_s17 = sld [smem:[#allocation4 + $0x2b]] }
  0x8a   : > { %v618_v22 = vmul.f32 %v1164_v15, %v617_v16  ;;  %s1181_s0 = sld [smem:[#allocation4 + $0x2c]]  ;;  %v1196_v16 = vld [vmem:[%s1672_s27 + $0x198] sm:$0xff] }
  0x8b   : > { %v517_v24 = vadd.f32 %v516_v17, %v511_v20  ;;  %v623_v20 = vstv %s1165_s18  ;;  %s1183_s3 = sld [smem:[#allocation4 + $0x2d]] }
  0x8c   : > { %v624_v26 = vmul.f32 %v1166_v19, %v623_v20  ;;  %s1185_s20 = sld [smem:[#allocation4 + $0x2e]]  ;;  %v1198_v20 = vld [vmem:[%s1672_s27 + $0x1a0] sm:$0xff] }
  0x8d   : > { %v523_v28 = vadd.f32 %v522_v21, %v517_v24  ;;  %v629_v24 = vstv %s1167_s21  ;;  %s1187_s16 = sld [smem:[#allocation4 + $0x2f]] }
  0x8e   : > { %v630_v30 = vmul.f32 %v1168_v23, %v629_v24  ;;  %s1189_s24 = sld [smem:[#allocation4 + $0x30]]  ;;  %v1200_v24 = vld [vmem:[%s1672_s27 + $0x1a8] sm:$0xff] }
  0x8f   : > { %v529_v32 = vadd.f32 %v528_v25, %v523_v28  ;;  %v635_v28 = vstv %s1169_s22  ;;  %s1191_s29 = sld [smem:[#allocation4 + $0x31]] }
  0x90   : > { %v636_v34 = vmul.f32 %v1170_v27, %v635_v28  ;;  %s1193_s30 = sld [smem:[#allocation4 + $0x32]] }
  0x91   : > { %v535_v36 = vadd.f32 %v534_v29, %v529_v32  ;;  %v641_v32 = vstv %s1171_s26  ;;  %s1195_s13 = sld [smem:[#allocation4 + $0x33]] }
  0x92   : > { %v642_v38 = vmul.f32 %v1172_v31, %v641_v32  ;;  %s1197_s15 = sld [smem:[#allocation4 + $0x34]] }
  0x93   : > { %v541_v40 = vadd.f32 %v540_v33, %v535_v36  ;;  %v647_v36 = vstv %s1173_s28  ;;  %s1199_s14 = sld [smem:[#allocation4 + $0x35]] }
  0x94   : > { %v648_v42 = vmul.f32 %v1174_v35, %v647_v36  ;;  %v732_v35 = vld [vmem:[%s1821_s5] sm:$0xff]  ;;  %v733_v36 = vld [vmem:[%s1821_s5 + $0x8] sm:$0xff]  ;;  %s840_s28 = sld [smem:[#allocation3]] }
  0x95   : > { %v547_v44 = vadd.f32 %v546_v37, %v541_v40  ;;  %v653_v40 = vstv %s1175_s2  ;;  %s1094_s2 = sshll.u32 %s1668_s9, 3 }
  0x96   : > { %v654_v46 = vmul.f32 %v1176_v39, %v653_v40 }
  0x97   : > { %v553_v48 = vadd.f32 %v552_v41, %v547_v44  ;;  %v659_v44 = vstv %s1177_s23  ;;  %s1214_s23 = sshll.u32 %s1460_s12, 7 }
  0x98   : > { %v660_v50 = vmul.f32 %v1178_v43, %v659_v44 }
  0x99   : > { %v559_v52 = vadd.f32 %v558_v45, %v553_v48  ;;  %v665_v48 = vstv %s1179_s17  ;;  %s399_s17 = scalar_lea.vmem [#allocation11], %s1094_s2 }
  0x9a   : > { %v666_v54 = vmul.f32 %v1180_v47, %v665_v48 }
  0x9b   : > { %v565_v56 = vadd.f32 %v564_v49, %v559_v52  ;;  %v671_v52 = vstv %s1181_s0  ;;  %s960_s0 = sshll.u32 %s399_s17, 4  ;;  %s961_s0 = int_to_ptr.vmem [resolvable:$true] %s960_s0 }
  0x9c   : > { %v672_v58 = vmul.f32 %v1182_v51, %v671_v52  ;;  %v841_v51 = vstv %s840_s28 }
  0x9d   : > { %v571_v60 = vadd.f32 %v570_v53, %v565_v56  ;;  %v677_v56 = vstv %s1183_s3 }
  0x9e   : > { %v678_v62 = vmul.f32 %v1184_v55, %v677_v56 }
  0x9f   : > { %v577_v1 = vadd.f32 %v576_v57, %v571_v60  ;;  %v683_v60 = vstv %s1185_s20 }
  0xa0   : > { %v684_v3 = vmul.f32 %v1186_v59, %v683_v60 }
  0xa1   : > { %v583_v5 = vadd.f32 %v582_v61, %v577_v1  ;;  %v689_v1 = vstv %s1187_s16  ;;  %s958_s16 = scalar_lea.hbm %s1824_s8, %s1214_s23 }
  0xa2   : > { %v690_v7 = vmul.f32 %v1188_v63, %v689_v1 }
  0xa3   : > { %v589_v9 = vadd.f32 %v588_v2, %v583_v5  ;;  %v695_v5 = vstv %s1189_s24  ;;  %s944_s24 = scalar_lea.sflag [#allocation6], %s1668_s9 }
  0xa4   : > { %v696_v11 = vmul.f32 %v1190_v4, %v695_v5 }
  0xa5   : > { %v595_v13 = vadd.f32 %v594_v6, %v589_v9  ;;  %v701_v9 = vstv %s1191_s29  ;;  %s1380_s29 = scalar_lea.vmem %s961_s0, 128 }
  0xa6   : > { %v702_v15 = vmul.f32 %v1192_v8, %v701_v9  ;;  %p1381_p3 = scmp.ne.s32.totalorder %s961_s0, %s1380_s29 }
  0xa7   : > { %v601_v17 = vadd.f32 %v600_v10, %v595_v13  ;;  %v707_v13 = vstv %s1193_s30  ;;  %s1477_s30 = smov [#allocation11]  }
  0xa8   : > { %v708_v19 = vmul.f32 %v1194_v12, %v707_v13  ;;  %p1382_p12 = pnand %p1381_p3, %p1850_p7 }
  0xa9   : > { %v607_v21 = vadd.f32 %v606_v14, %v601_v17  ;;  %v713_v17 = vstv %s1195_s13  ;;  %s1384_s13 = sshll.u32 %s1477_s30, 4  ;;  %s1385_s13 = int_to_ptr.vmem [resolvable:$false] %s1384_s13 }
  0xaa   : > { %v714_v23 = vmul.f32 %v1196_v16, %v713_v17  ;;  %p1383_p2 = pneg %p1382_p12  ;;  %s1386_s12 = scalar_lea.vmem %s1385_s13, 256 }
  0xab   : > { %v613_v25 = vadd.f32 %v612_v18, %v607_v21  ;;  %v719_v21 = vstv %s1197_s15  ;;  %p1387_p9 = scmp.lt.s32.totalorder %s961_s0, %s1385_s13  ;;  %p1388_p11 = scmp.lt.s32.totalorder %s1386_s12, %s1380_s29 }
  0xac   : > { %v720_v27 = vmul.f32 %v1198_v20, %v719_v21 }
  0xad   : > { %v619_v29 = vadd.f32 %v618_v22, %v613_v25  ;;  %v725_v25 = vstv %s1199_s14  ;;  %p1389_p0 = por %p1388_p11, %p1387_p9 }
  0xaf   : > { %v625_v33 = vadd.f32 %v624_v26, %v619_v29  ;;  %v726_v29 = vmul.f32 %v1200_v24, %v725_v25  ;;  %p1390_p1 = pnand %p1389_p0, %p1383_p2 }
  0xb1   : > { %v631_v37 = vadd.f32 %v630_v30, %v625_v33  ;;  %v729_v33 = vld [vmem:[%s1680_s25 + $0x8] sm:$0xff] }
  0xb3   : > { %v637_v41 = vadd.f32 %v636_v34, %v631_v37  ;;  %v728_v34 = vld [vmem:[%s1680_s25] sm:$0xff] }
  0xb5   : > { %v643_v45 = vadd.f32 %v642_v38, %v637_v41 }
  0xb7   : > { %v649_v49 = vadd.f32 %v648_v42, %v643_v45 }
  0xb9   : > { %v655_v53 = vadd.f32 %v654_v46, %v649_v49 }
  0xbb   : > { %v661_v57 = vadd.f32 %v660_v50, %v655_v53  ;;  %v839_v50 = vld [vmem:[%s1823_s7] sm:$0x1] }
  0xbd   : > { %v667_v61 = vadd.f32 %v666_v54, %v661_v57 }
  0xbf   : > { %v673_v2 = vadd.f32 %v672_v58, %v667_v61 }
  0xc1   : > { %v679_v6 = vadd.f32 %v678_v62, %v673_v2  ;;  %v929_v62 = vlaneseq }
  0xc3   : > { %v685_v10 = vadd.f32 %v684_v3, %v679_v6  ;;  %v930_v63 = vshrl.u32 %v929_v62, 7 }
  0xc5   : > { %v691_v14 = vadd.f32 %v690_v7, %v685_v10  ;;  %v931_v1 = vsub.s32 0, %v930_v63 }
  0xc7   : > { %v697_v18 = vadd.f32 %v696_v11, %v691_v14 }
  0xc9   : > { %v703_v22 = vadd.f32 %v702_v15, %v697_v18 }
  0xcb   : > { %v709_v26 = vadd.f32 %v708_v19, %v703_v22 }
  0xcd   : > { %v715_v28 = vadd.f32 %v714_v23, %v709_v26 }
  0xcf   : > { %v721_v30 = vadd.f32 %v720_v27, %v715_v28 }
  0xd1   : > { %v1757_v31 = vadd.f32 %v726_v29, %v721_v30 }
  0xd3   : > { %v731_v32 = vcombine.high %v1757_v31, %v1757_v31 }
  0xd5   : > { %1201 = vmatprep.subr.msk.mxu0 %vm753_vm0, %v731_v32 }
  0xd6   : > { %1202 = vmatpush1.msk.msra.mxu0 %vm753_vm0, %v1757_v31 }
  0xd7   : > { %788 = vmatprep.subr.mxu0 %v729_v33 }
  0xd8   : > { %789 = vmatpush1.msra.mxu0 %v728_v34 }
  0xd9   : > { %1203 = vmatmul.mubr.msk.f32.vlgmr.msra.gmra.mxu0 %vm746_vm1, %v732_v35 }
  0xda   : > { %828 = vmatprep.mubr.f32.mxu0 %v1475_v0 }
  0xdc   : > { %v744_v37 = vpop.permute.xlu0 %743 }
  0xdd   : > { %1204 = vmatmul.mubr.msk.f32.gmra.mxu0 %vm746_vm1, %v733_v36 }
  0xe0   : > { %v739_v41 = vpop.permute.xlu0 %738 }
 0x199   : > { %v824_v38 = vpop.f32.mrf.mxu0 }
 0x19a   : > { %v825_v46 = vadd.f32 %v824_v38, %v739_v41 }
 0x19b   : > { %v826_v39 = vpop.f32.mrf.mxu0 }
 0x19c   : > { %v827_v44 = vadd.f32 %v826_v39, %v739_v41  ;;  %v835_v0 = vmax.f32 %v825_v46, 0.0 }
 0x19d   : > { %v830_v40 = vpop.f32.mrf.mxu0 }
 0x19e   : > { %v831_v42 = vadd.f32 %v830_v40, %v744_v37  ;;  %v836_v49 = vmax.f32 %v827_v44, 0.0 }
 0x19f   : > { %v832_v43 = vpop.f32.mrf.mxu0 }
 0x1a0   : > { %v833_v45 = vadd.f32 %v832_v43, %v744_v37  ;;  %v837_v48 = vmax.f32 %v831_v42, 0.0 }
 0x1a2   : > { %v838_v47 = vmax.f32 %v833_v45, 0.0 }
 0x1a4   : > { %874 = vmatprep.subr.mxu1 %v838_v47 }
 0x1a5   : > { %875 = vmatpush1.msra.mxu1 %v837_v48 }
 0x1a6   : > { %876 = vmatprep.subr.mxu1 %v836_v49 }
 0x1a7   : > { %877 = vmatpush1.msra.mxu1 %v835_v0 }
 0x1a8   : > { %1205 = vmatmul.mubr.msk.f32.vlgmr.msra.gmra.mxu1 %vm842_vm2, %v839_v50 }
 0x268   : > { %v912_v52 = vpop.f32.mrf.mxu1 }
 0x269   : > { %v913_v53 = vadd.f32 %v912_v52, %v841_v51 }
 0x26a   : > { %v914_v54 = vpop.f32.mrf.mxu1 }
 0x26b   : > { %v1206_v55 = vmul.f32 -1.442695, %v913_v53  ;;  %v915_v56 = vadd.f32 %v914_v54, %v841_v51 }
 0x26d   : > { %1301 = vpow2.f32 %v1206_v55  ;;  %v1207_v57 = vmul.f32 -1.442695, %v915_v56 }
 0x26f   : > { %1303 = vpow2.f32 %v1207_v57 }
 0x27a   : > { %v1302_v58 = vpop.eup %1301 }
 0x27b   : > { %v923_v59 = vadd.f32 1.0, %v1302_v58 }
 0x27c   : > { %v1304_v60 = vpop.eup %1303 }
 0x27d   : > { %1305 = vrcp.f32 %v923_v59  ;;  %v924_v61 = vadd.f32 1.0, %v1304_v60 }
 0x27f   : > { %1307 = vrcp.f32 %v924_v61 }
 0x28a   : > { %v1306_v2 = vpop.eup %1305 }
 0x28b   : > { %v932_v4 = vrot.slane %v1306_v2, %v931_v1 }
 0x28c   : > { %v1308_v3 = vpop.eup %1307 }
 0x28d   : > { %v936_v5 = vrot.slane %v1308_v3, %v931_v1 }
 0x28f   : > { %v939_v6 = vcombine.low %v932_v4, %v936_v5 }
 0x291   : > { %v941_v7 = vmul.f32 %v939_v6, %v1757_v31 }
 0x293   : > { %942 = vst [vmem:[%s399_s17] sm:$0xff] %v941_v7 }
 0x294   : > { %1393 = shalt.err (!%p1390_p1)
}
 0x295   : > { %s1394_s15 = scalar_lea.hbm %s958_s16, 128  ;;  %s1398_s18 = scalar_lea.hbm %s1824_s8, 256 }
 0x296   : > { %p1395_p8 = scmp.ne.s32.totalorder %s958_s16, %s1394_s15  ;;  %p1399_p6 = scmp.lt.s32.totalorder %s958_s16, %s1824_s8 }
 0x297   : > { %p1400_p10 = scmp.lt.s32.totalorder %s1398_s18, %s1394_s15 }
 0x298   : > { %p1396_p13 = pnand %p1395_p8, %p1850_p7 }
 0x299   : > { %p1401_p5 = por %p1400_p10, %p1399_p6 }
 0x29a   : > { %p1397_p4 = pneg %p1396_p13 }
 0x29c   : > { %p1402_p3 = pnand %p1401_p5, %p1397_p4 }
 0x29e   : > { %1405 = shalt.err (!%p1402_p3)
}
 0x29f   : > { %1226 = dma.vmem_to_hbm [thread:$0]  (%p1850_p7), %s961_s0, 128, %s958_s16, %s944_s24  }
 0x2a0 PF: > { %s1851_s22 = sld [smem:[#allocation16_spill]] }
 0x2a1   : > { %s1852_s25 = sld [smem:[#allocation18_spill]] }
 0x2a2   : > { %s1853_s26 = sld [smem:[#allocation17_spill]] }
 0x2a6   : > { %s972_s28 = sand.u32 1, %s1851_s22  }
 0x2a7   : > { %p1854_p12 = scmp.ne.s32.totalorder %s1852_s25, 0  ;;  %s973_s2 = scalar_lea.sflag [#allocation6], %s972_s28 }
 0x2a8   : > { %p1855_p2 = scmp.ge.s32.totalorder %s1853_s26, 2 }
 0x2aa   : > { %p1240_p9 = pnand %p1855_p2, %p1854_p12 }
 0x2ac   : > { %p1241_p11 = pneg %p1240_p9 }
 0x2ae   : > { %1443 = dma.done.wait (%p1241_p11), %s973_s2, 128  }
 0x2af   : > { %1445 = vsyncadd (%p1241_p11), %s973_s2, 4294967168  ;;  %s30_s13 = sadd.s32 1, %s1853_s26   ;;  %s1856_s23 = sld [smem:[#allocation20_spill]] }
 0x2b0   : > { %p27_p0 = scmp.ge.s32.totalorder %s30_s13, 4   ;;  %s1857_s19 = sld [smem:[#allocation19_spill]] }
 0x2b1   : > { %s1858_s9 = smov %s1452_s10  ;;  %s1859_s10 = smov %s1456_s11 }
 0x2b2   : > { %s1861_s12 = smov %s1464_s1  ;;  %29 = sbr.rel (!%p27_p0) target bundleno = 14 (0xe), region = 168 }
 0x2b5   : > { %s1860_s11 = smov %s1856_s23 }
 0x2b6   : > { %s1862_s1 = smov %s1857_s19 }
 0x2b7   :  { %978 = vsyncpa [#allocation5], 1 }
 0x2b8   :  { %980 = vsyncpa [#allocation5 + $0x1], 1 }
 0x2b9   :  { %981 = vsyncpa [#allocation10], 1 }
 0x2ba   :  { %983 = vsyncpa [#allocation10 + $0x1], 1 }
 0x2bb   :  { %984 = vsyncpa [#allocation6], 1 }
 0x2bc   :  { %986 = vsyncpa [#allocation6 + $0x1], 1 }
 0x2bd   :  { %987 = vsyncpa [#allocation7], 1 }
 0x2be   :  { %989 = vsyncpa [#allocation7 + $0x1], 1 }

</bundles_post_ra>
